<compile_context>
chip_gen: v6e
topology: v6e:2x2x1
jax: 0.10.0
libtpu: 0.0.40
codegen_flags: <defaults>
</compile_context>

<pallas_src>
import functools

import jax
import jax.numpy as jnp
from jax.experimental import pallas as pl
from jax.experimental.pallas import tpu as pltpu


# ---------------------------------------------------------------- utilities --
def make_divisible(v, divisor=8, min_value=None):
    if min_value is None:
        min_value = divisor
    new_v = max(min_value, int(v + divisor / 2) // divisor * divisor)
    if new_v < 0.9 * v:
        new_v += divisor
    return new_v


def _vmem_budget_bytes():
    cap = 64 * 1024 * 1024                      # conservative fallback (v7x-sized VMEM)
    try:
        cap = int(pltpu.get_tpu_info().vmem_capacity_bytes)
    except Exception:
        pass
    # ~45% of physical VMEM: ~57 MiB on 128 MiB chips (v5e/v6e), ~28 MiB on v7x.
    return int(0.45 * cap), cap


def _estimate_step_vmem(TH, W, Cin, Cout, hidden, stride, act_bytes, out_bytes):
    THo, Wo = TH // stride, W // stride
    f32 = 4
    hid_scratch = (TH + 2) * W * hidden * f32
    flat_scratch = THo * W * hidden * f32 if stride == 2 else 0
    inputs = 2 * (TH + 2) * W * Cin * act_bytes            # double-buffered blocks
    outputs = 2 * THo * Wo * Cout * out_bytes
    temps = 3 * (TH + 2) * W * hidden * f32                # rolled copy + acc + h2
    weights = (Cin * hidden + hidden * Cout) * 2 + (9 + 3) * hidden * f32 + Cout * f32
    return hid_scratch + flat_scratch + inputs + outputs + temps + weights


def _pick_row_tile(H, W, Cin, Cout, hidden, stride, act_bytes, out_bytes, budget):
    """Largest useful row tile that divides H (even for stride 2) and fits VMEM."""
    divs = [d for d in range(1, H + 1)
            if H % d == 0 and (stride == 1 or d % 2 == 0)]
    fitting = [d for d in divs
               if _estimate_step_vmem(d, W, Cin, Cout, hidden, stride,
                                      act_bytes, out_bytes) <= budget]
    if not fitting:
        # TODO(synk): masked ragged last tile instead of a tiny divisor for huge W.
        return divs[0]
    # Ascending: pick the first tile big enough to amortize the ~0.35us step overhead
    # and fill the MXU M-dim, but keep several grid steps for pipelining and the v7x
    # megacore; otherwise take the largest tile that fits the budget.
    for d in fitting:
        if d * W >= 2048:
            return d
    return fitting[-1]


# ------------------------------------------------------------------- kernel --
def _inverted_residual_kernel(
        x_ref, x_top_ref, x_bot_ref, w1_ref, b1_ref, wdw_ref, b2_ref, w3_ref,
        b3_ref, o_ref, hid_ref, flat_ref, *,
        TH, W, hidden, stride, has_expand, use_res, mxu_dtype):
    t = pl.program_id(1)
    nt = pl.num_programs(1)

    def expand(rows):
        # exp_1x1 pointwise conv (+ folded BN + SiLU): (R, W, Cin) -> (R, W, hidden) f32
        R, _, Cin = rows.shape
        if has_expand:
            h = jnp.dot(rows.reshape(R * W, Cin).astype(mxu_dtype), w1_ref[...],
                        preferred_element_type=jnp.float32)
            h = h + b1_ref[...]
            h = h * jax.nn.sigmoid(h)
            return h.reshape(R, W, hidden)
        return rows.astype(jnp.float32)                   # hidden == Cin here

    x_main = x_ref[0]                                      # (TH, W, Cin)

    # Top halo row (global row t*TH - 1).  The depthwise zero padding acts on the
    # *expanded* tensor, so out-of-image rows are zeroed after exp_1x1
    # (silu(bias) != 0 otherwise).
    h_top = expand(x_top_ref[0]) * (t != 0).astype(jnp.float32)

    if stride == 1:
        THo, Wo = TH, W
        h_bot = expand(x_bot_ref[0]) * (t != nt - 1).astype(jnp.float32)
        hid_ref[0:1] = h_top
        hid_ref[1:TH + 1] = expand(x_main)
        hid_ref[TH + 1:TH + 2] = h_bot
        sources = (hid_ref[...],)                          # (TH+2, W, hidden)
        taps = ((0, 0), (0, 1), (0, 2))                    # ky -> (source, row offset)
    else:
        THo, Wo = TH // 2, W // 2
        # Even/odd row split: decimated output row r is centred on input row
        # t*TH + 2r, so the only rows ever touched are
        #   E[r] = row t*TH + 2r      (ky = 1)
        #   O[r] = row t*TH + 2r - 1  (ky = 0 uses O[r], ky = 2 uses O[r+1])
        # and the bottom halo row is never needed.
        xr = x_main.reshape(THo, 2, W, x_main.shape[2])
        hid_ref[0:THo] = expand(xr[:, 0])                  # E
        hid_ref[THo:THo + 1] = h_top                       # O[0] (top halo)
        hid_ref[THo + 1:2 * THo + 1] = expand(xr[:, 1])    # O[1:]
        sources = (hid_ref[0:THo], hid_ref[THo:2 * THo + 1])
        taps = ((1, 0), (0, 0), (1, 1))

    # --- conv_3x3 depthwise (+ folded BN + SiLU): kx taps are XLU rolls along W with
    # a (1, W, 1) edge mask, ky taps are plain row offsets; only one rolled copy is
    # live at a time and the accumulator starts from the first tap.
    wdw = wdw_ref[...]                                     # (9, hidden), loaded once
    col = jax.lax.broadcasted_iota(jnp.int32, (1, W, 1), 1)
    acc = None
    for dxi, dx in enumerate((-1, 0, 1)):
        if dx == 0:
            rolled = sources
        else:
            rolled = []
            for s in sources:
                r = pltpu.roll(s, shift=(-dx) % W, axis=1)
                mask = (col >= 1) if dx == -1 else (col <= W - 2)
                rolled.append(jnp.where(mask, r, 0.0))
        for ky, (si, off) in enumerate(taps):
            k = ky * 3 + dxi
            term = rolled[si][off:off + THo] * wdw[k:k + 1, :]
            acc = term if acc is None else acc + term
    h2 = acc + b2_ref[...]
    h2 = h2 * jax.nn.sigmoid(h2)                           # (THo, W, hidden) f32
    # TODO(synk): keep h2 / the taps in bf16 on v6e/v7x (bf16 VPU+EUP) to halve the
    # elementwise slot pressure; keep f32 on v5e.

    # --- red_1x1 (+ folded BN, no activation).  For stride 2 the column decimation
    # happens here, *before* the matmul: with W even, original column 2*k lands on
    # the even rows of the flattened (THo*W, hidden) buffer, so a stride-2 sublane
    # read keeps exactly the even columns.
    h2f = h2.reshape(THo * W, hidden)
    if stride == 2:
        flat_ref[...] = h2f
        h2f = flat_ref[pl.ds(0, THo * Wo, 2), :]
    y = jnp.dot(h2f.astype(mxu_dtype), w3_ref[...],
                preferred_element_type=jnp.float32)
    y = (y + b3_ref[...]).reshape(THo, Wo, -1)

    if use_res:
        y = y + x_main.astype(jnp.float32)
    o_ref[0] = y.astype(o_ref.dtype)


# ------------------------------------------------------------------ wrapper --
def _fold_bn(bn, eps=1e-5):
    gamma, beta, mean, var = bn
    scale = gamma / jnp.sqrt(var + eps)
    shift = beta - mean * scale
    return scale.reshape(1, -1), shift.reshape(1, -1)


def inverted_residual_forward_nhwc(x_nhwc, params, *, in_channels, out_channels,
                                   stride, expand_ratio, skip_connection=True,
                                   mxu_dtype=jnp.bfloat16, act_dtype=jnp.bfloat16,
                                   out_dtype=None):
    B, H, W, Cin = x_nhwc.shape
    assert Cin == in_channels and stride in (1, 2)
    hidden = make_divisible(int(round(in_channels * expand_ratio)), 8)
    Cout = out_channels
    has_expand = expand_ratio != 1
    if not has_expand:
        assert hidden == Cin, "expand_ratio==1 requires in_channels == hidden_dim"
    use_res = stride == 1 and in_channels == out_channels and skip_connection
    out_dtype = act_dtype if out_dtype is None else out_dtype

    # In-kernel stride-2 decimation needs even H and W (the common backbone case).
    kernel_stride = stride
    if stride == 2 and (H % 2 or W % 2):
        # TODO(synk): masked ragged edge for odd H/W instead of this fallback.
        kernel_stride = 1

    x = x_nhwc.astype(act_dtype)

    # Fold eval-mode BatchNorm: scales go into the conv weights (host/HBM side, once);
    # only the shifts survive as in-kernel bias adds.
    if has_expand:
        s1, b1 = _fold_bn(params["bn1"])
        w1 = (params["w1"] * s1).astype(mxu_dtype)                      # (Cin, hidden)
    else:
        w1 = jnp.zeros((Cin, hidden), mxu_dtype)                        # unused
        b1 = jnp.zeros((1, hidden), jnp.float32)
    s2, b2 = _fold_bn(params["bn2"])
    wdw = (params["wdw"] * s2).reshape(9, hidden).astype(jnp.float32)   # VPU stays f32
    s3, b3 = _fold_bn(params["bn3"])
    w3 = (params["w3"] * s3).astype(mxu_dtype)                          # (hidden, Cout)

    act_bytes = jnp.finfo(act_dtype).bits // 8
    out_bytes = jnp.finfo(out_dtype).bits // 8
    budget, vmem_cap = _vmem_budget_bytes()
    TH = _pick_row_tile(H, W, Cin, Cout, hidden, kernel_stride,
                        act_bytes, out_bytes, budget)
    n_row_tiles = H // TH
    THo, Wo = TH // kernel_stride, W // kernel_stride

    kernel = functools.partial(
        _inverted_residual_kernel,
        TH=TH, W=W, hidden=hidden, stride=kernel_stride,
        has_expand=has_expand, use_res=use_res, mxu_dtype=mxu_dtype)

    def wspec(shape):
        return pl.BlockSpec(shape, lambda b, t: (0, 0))

    flat_shape = (THo * W, hidden) if kernel_stride == 2 else (8, 128)  # dummy if s=1

    out = pl.pallas_call(
        kernel,
        out_shape=jax.ShapeDtypeStruct((B, n_row_tiles * THo, Wo, Cout), out_dtype),
        grid=(B, n_row_tiles),
        in_specs=[
            # main TH-row block + 1-row top/bottom halos (clamped at the image edge;
            # out-of-image halo rows are zeroed in-kernel after the expansion).
            pl.BlockSpec((1, TH, W, Cin), lambda b, t: (b, t, 0, 0)),
            pl.BlockSpec((1, 1, W, Cin),
                         lambda b, t: (b, jnp.maximum(t * TH - 1, 0), 0, 0)),
            pl.BlockSpec((1, 1, W, Cin),
                         lambda b, t: (b, jnp.minimum(t * TH + TH, H - 1), 0, 0)),
            wspec((Cin, hidden)),
            wspec((1, hidden)),
            wspec((9, hidden)),
            wspec((1, hidden)),
            wspec((hidden, Cout)),
            wspec((1, Cout)),
        ],
        out_specs=pl.BlockSpec((1, THo, Wo, Cout), lambda b, t: (b, t, 0, 0)),
        scratch_shapes=[
            pltpu.VMEM((TH + 2, W, hidden), jnp.float32),
            pltpu.VMEM(flat_shape, jnp.float32),
        ],
        compiler_params=pltpu.CompilerParams(
            dimension_semantics=("parallel", "parallel"),
            vmem_limit_bytes=min(int(0.75 * vmem_cap), 96 * 1024 * 1024)),
    )(x, x, x, w1, b1, wdw, b2, w3, b3)

    if stride == 2 and kernel_stride == 1:
        out = out[:, ::2, ::2, :]
    return out


def inverted_residual_forward(x_nchw, params, **kwargs):
    # NCHW boundary only for parity with the PyTorch module; inside a full backbone
    # keep activations NHWC/bf16 and call inverted_residual_forward_nhwc directly.
    x_nhwc = jnp.transpose(x_nchw, (0, 2, 3, 1))
    out = inverted_residual_forward_nhwc(x_nhwc, params, **kwargs)
    return jnp.transpose(out, (0, 3, 1, 2))


# -------------------------------------------------------------- params init --
def init_params(key, in_channels, out_channels, expand_ratio):
    hidden = make_divisible(int(round(in_channels * expand_ratio)), 8)
    ks = jax.random.split(key, 16)

    def bn(kg, kb, km, kv, c):
        gamma = 1.0 + 0.1 * jax.random.normal(kg, (c,), jnp.float32)
        beta = 0.1 * jax.random.normal(kb, (c,), jnp.float32)
        mean = 0.1 * jax.random.normal(km, (c,), jnp.float32)
        var = jax.random.uniform(kv, (c,), jnp.float32, minval=0.5, maxval=1.5)
        return (gamma, beta, mean, var)

    return {
        "w1": 0.2 * jax.random.normal(ks[0], (in_channels, hidden), jnp.float32),
        "bn1": bn(ks[1], ks[2], ks[3], ks[4], hidden),
        "wdw": 0.2 * jax.random.normal(ks[5], (3, 3, hidden), jnp.float32),
        "bn2": bn(ks[6], ks[7], ks[8], ks[9], hidden),
        "w3": 0.2 * jax.random.normal(ks[10], (hidden, out_channels), jnp.float32),
        "bn3": bn(ks[11], ks[12], ks[13], ks[14], out_channels),
    }


# -------------------------------------------------------- pure-JAX reference --
def reference_forward(x_nchw, params, *, in_channels, out_channels,
                      stride, expand_ratio, skip_connection=True, eps=1e-5):
    x = jnp.transpose(x_nchw, (0, 2, 3, 1)).astype(jnp.float32)
    B, H, W, Cin = x.shape
    hidden = make_divisible(int(round(in_channels * expand_ratio)), 8)
    Ho = (H - 1) // stride + 1
    Wo = (W - 1) // stride + 1

    def bn_apply(h, bn):
        gamma, beta, mean, var = bn
        return (h - mean) / jnp.sqrt(var + eps) * gamma + beta

    if expand_ratio != 1:
        h = jnp.einsum("bhwc,cd->bhwd", x, params["w1"])
        h = bn_apply(h, params["bn1"])
        h = h * jax.nn.sigmoid(h)
    else:
        h = x

    hp = jnp.pad(h, ((0, 0), (1, 1), (1, 1), (0, 0)))
    acc = jnp.zeros((B, Ho, Wo, hidden), jnp.float32)
    for ky in range(3):
        for kx in range(3):
            tap = hp[:, ky:ky + stride * Ho:stride, kx:kx + stride * Wo:stride, :]
            acc = acc + tap * params["wdw"][ky, kx, :]
    h2 = bn_apply(acc, params["bn2"])
    h2 = h2 * jax.nn.sigmoid(h2)

    y = jnp.einsum("bhwd,de->bhwe", h2, params["w3"])
    y = bn_apply(y, params["bn3"])

    if stride == 1 and in_channels == out_channels and skip_connection:
        y = y + x
    return jnp.transpose(y, (0, 3, 1, 2))


# --------------------------------------------------------------------- main --
if __name__ == "__main__":
    root = jax.random.PRNGKey(0)
    k1, k2, k3, k4, k5, k6 = jax.random.split(root, 6)

    # --- Config 1: stride=1, expand=4, Cin == Cout -> residual path ---------------
    B, Cin, H, W = 2, 4, 16, 16
    Cout, stride, expand_ratio = 4, 1, 4
    x = jax.random.normal(k1, (B, Cin, H, W), jnp.float32)
    params = init_params(k2, Cin, Cout, expand_ratio)
    ref = reference_forward(x, params, in_channels=Cin, out_channels=Cout,
                            stride=stride, expand_ratio=expand_ratio)

    # (a) all-f32 path: tight structural check (rolls, masks, halos, tiling).
    out_f32 = inverted_residual_forward(
        x, params, in_channels=Cin, out_channels=Cout, stride=stride,
        expand_ratio=expand_ratio, mxu_dtype=jnp.float32, act_dtype=jnp.float32)
    out_f32 = jax.block_until_ready(out_f32)
    assert out_f32.shape == (B, Cout, H, W), out_f32.shape
    err = float(jnp.max(jnp.abs(out_f32 - ref)))
    assert err < 2e-3, f"f32 path max abs error {err}"

    # (b) default path: bf16 HBM activations/output + bf16 MXU operands.
    out_bf16 = inverted_residual_forward(
        x, params, in_channels=Cin, out_channels=Cout, stride=stride,
        expand_ratio=expand_ratio)
    out_bf16 = jax.block_until_ready(out_bf16)
    err_bf16 = float(jnp.max(jnp.abs(out_bf16.astype(jnp.float32) - ref)))
    assert err_bf16 < 1e-1, f"bf16 path max abs error {err_bf16}"

    # --- Config 2: stride=2 downsampling block, Cin != Cout (no residual); this
    # exercises the in-kernel row/column decimation before red_1x1. -----------------
    B2, Cin2, H2, W2 = 2, 4, 12, 16
    Cout2, stride2, er2 = 8, 2, 4
    x2 = jax.random.normal(k3, (B2, Cin2, H2, W2), jnp.float32)
    params2 = init_params(k4, Cin2, Cout2, er2)
    out2 = inverted_residual_forward(
        x2, params2, in_channels=Cin2, out_channels=Cout2, stride=stride2,
        expand_ratio=er2, mxu_dtype=jnp.float32, act_dtype=jnp.float32)
    out2 = jax.block_until_ready(out2)
    ref2 = reference_forward(x2, params2, in_channels=Cin2, out_channels=Cout2,
                             stride=stride2, expand_ratio=er2)
    assert out2.shape == (B2, Cout2, 6, 8), out2.shape
    err2 = float(jnp.max(jnp.abs(out2 - ref2)))
    assert err2 < 2e-3, f"stride-2 path max abs error {err2}"

    # --- Config 3: expand_ratio=1 (no exp_1x1), residual path ----------------------
    B3, Cin3, H3, W3 = 2, 8, 8, 16
    Cout3, stride3, er3 = 8, 1, 1
    x3 = jax.random.normal(k5, (B3, Cin3, H3, W3), jnp.float32)
    params3 = init_params(k6, Cin3, Cout3, er3)
    out3 = inverted_residual_forward(
        x3, params3, in_channels=Cin3, out_channels=Cout3, stride=stride3,
        expand_ratio=er3, mxu_dtype=jnp.float32, act_dtype=jnp.float32)
    out3 = jax.block_until_ready(out3)
    ref3 = reference_forward(x3, params3, in_channels=Cin3, out_channels=Cout3,
                             stride=stride3, expand_ratio=er3)
    err3 = float(jnp.max(jnp.abs(out3 - ref3)))
    assert err3 < 2e-3, f"expand=1 path max abs error {err3}"

    print("KERNEL_OK")
</pallas_src>

<mosaic_0001>
module attributes {stable_mosaic.version = 11 : i64} {
  func.func @_inverted_residual_kernel(%arg0: i32, %arg1: i32, %arg2: memref<1x16x16x4xf32, #tpu.memory_space<vmem>>, %arg3: memref<1x1x16x4xf32, #tpu.memory_space<vmem>>, %arg4: memref<1x1x16x4xf32, #tpu.memory_space<vmem>>, %arg5: memref<4x16xf32, #tpu.memory_space<vmem>>, %arg6: memref<1x16xf32, #tpu.memory_space<vmem>>, %arg7: memref<9x16xf32, #tpu.memory_space<vmem>>, %arg8: memref<1x16xf32, #tpu.memory_space<vmem>>, %arg9: memref<16x4xf32, #tpu.memory_space<vmem>>, %arg10: memref<1x4xf32, #tpu.memory_space<vmem>>, %arg11: memref<1x16x16x4xf32, #tpu.memory_space<vmem>>, %arg12: memref<18x16x16xf32, #tpu.memory_space<vmem>>, %arg13: memref<8x128xf32, #tpu.memory_space<vmem>>) attributes {dimension_semantics = [#tpu.dimension_semantics<parallel>, #tpu.dimension_semantics<parallel>], iteration_bounds = array<i64: 2, 1>, scalar_prefetch = 0 : i64, scratch_operands = 2 : i64, tpu.core_type = #tpu.core_type<tc>, window_params = [{transform_indices = @transform_0, window_bounds = array<i64: 1, 16, 16, 4>}, {transform_indices = @transform_1, window_bounds = array<i64: 1, 1, 16, 4>}, {transform_indices = @transform_2, window_bounds = array<i64: 1, 1, 16, 4>}, {pipeline_mode = #tpu.pipeline_mode<synchronous>, transform_indices = @transform_3, window_bounds = array<i64: 4, 16>}, {pipeline_mode = #tpu.pipeline_mode<synchronous>, transform_indices = @transform_4, window_bounds = array<i64: 1, 16>}, {pipeline_mode = #tpu.pipeline_mode<synchronous>, transform_indices = @transform_5, window_bounds = array<i64: 9, 16>}, {pipeline_mode = #tpu.pipeline_mode<synchronous>, transform_indices = @transform_6, window_bounds = array<i64: 1, 16>}, {pipeline_mode = #tpu.pipeline_mode<synchronous>, transform_indices = @transform_7, window_bounds = array<i64: 16, 4>}, {pipeline_mode = #tpu.pipeline_mode<synchronous>, transform_indices = @transform_8, window_bounds = array<i64: 1, 4>}, {transform_indices = @transform_9, window_bounds = array<i64: 1, 16, 16, 4>}]} {
    %c0 = arith.constant 0 : index
    %c0_0 = arith.constant 0 : index
    %c0_1 = arith.constant 0 : index
    %c0_2 = arith.constant 0 : index
    %0 = vector.load %arg2[%c0, %c0_0, %c0_1, %c0_2] : memref<1x16x16x4xf32, #tpu.memory_space<vmem>>, vector<1x16x16x4xf32>
    %1 = vector.shape_cast %0 : vector<1x16x16x4xf32> to vector<16x16x4xf32>
    %c0_3 = arith.constant 0 : index
    %c0_4 = arith.constant 0 : index
    %c0_5 = arith.constant 0 : index
    %c0_6 = arith.constant 0 : index
    %2 = vector.load %arg3[%c0_3, %c0_4, %c0_5, %c0_6] : memref<1x1x16x4xf32, #tpu.memory_space<vmem>>, vector<1x1x16x4xf32>
    %3 = vector.shape_cast %2 : vector<1x1x16x4xf32> to vector<1x16x4xf32>
    %4 = vector.shape_cast %3 : vector<1x16x4xf32> to vector<16x4xf32>
    %c0_7 = arith.constant 0 : index
    %c0_8 = arith.constant 0 : index
    %5 = vector.load %arg5[%c0_7, %c0_8] : memref<4x16xf32, #tpu.memory_space<vmem>>, vector<4x16xf32>
    %cst = arith.constant dense<0.000000e+00> : vector<16x16xf32>
    %6 = tpu.matmul %4, %5, %cst {dimension_numbers = #tpu.dot_dimension_numbers<[1], [0], [0], [1], [0, 0, 1, 1], [], []>} : vector<16x4xf32>, vector<4x16xf32>, vector<16x16xf32> -> vector<16x16xf32>
    %c0_9 = arith.constant 0 : index
    %c0_10 = arith.constant 0 : index
    %7 = vector.load %arg6[%c0_9, %c0_10] : memref<1x16xf32, #tpu.memory_space<vmem>>, vector<1x16xf32>
    %8 = vector.broadcast %7 : vector<1x16xf32> to vector<16x16xf32>
    %9 = arith.addf %6, %8 : vector<16x16xf32>
    %10 = arith.negf %9 : vector<16x16xf32>
    %11 = math.exp %10 : vector<16x16xf32>
    %cst_11 = arith.constant 1.000000e+00 : f32
    %12 = vector.broadcast %cst_11 : f32 to vector<16x16xf32>
    %13 = arith.addf %12, %11 : vector<16x16xf32>
    %14 = arith.divf %12, %13 : vector<16x16xf32>
    %15 = arith.mulf %9, %14 : vector<16x16xf32>
    %16 = vector.shape_cast %15 : vector<16x16xf32> to vector<1x16x16xf32>
    %c0_i32 = arith.constant 0 : i32
    %17 = arith.cmpi ne, %arg1, %c0_i32 : i32
    %18 = arith.extui %17 : i1 to i32
    %19 = arith.sitofp %18 : i32 to f32
    %20 = vector.broadcast %19 : f32 to vector<1x16x16xf32>
    %21 = arith.mulf %16, %20 : vector<1x16x16xf32>
    %c0_12 = arith.constant 0 : index
    %c0_13 = arith.constant 0 : index
    %c0_14 = arith.constant 0 : index
    %c0_15 = arith.constant 0 : index
    %22 = vector.load %arg4[%c0_12, %c0_13, %c0_14, %c0_15] : memref<1x1x16x4xf32, #tpu.memory_space<vmem>>, vector<1x1x16x4xf32>
    %23 = vector.shape_cast %22 : vector<1x1x16x4xf32> to vector<1x16x4xf32>
    %24 = vector.shape_cast %23 : vector<1x16x4xf32> to vector<16x4xf32>
    %c0_16 = arith.constant 0 : index
    %c0_17 = arith.constant 0 : index
    %25 = vector.load %arg5[%c0_16, %c0_17] : memref<4x16xf32, #tpu.memory_space<vmem>>, vector<4x16xf32>
    %cst_18 = arith.constant dense<0.000000e+00> : vector<16x16xf32>
    %26 = tpu.matmul %24, %25, %cst_18 {dimension_numbers = #tpu.dot_dimension_numbers<[1], [0], [0], [1], [0, 0, 1, 1], [], []>} : vector<16x4xf32>, vector<4x16xf32>, vector<16x16xf32> -> vector<16x16xf32>
    %c0_19 = arith.constant 0 : index
    %c0_20 = arith.constant 0 : index
    %27 = vector.load %arg6[%c0_19, %c0_20] : memref<1x16xf32, #tpu.memory_space<vmem>>, vector<1x16xf32>
    %28 = vector.broadcast %27 : vector<1x16xf32> to vector<16x16xf32>
    %29 = arith.addf %26, %28 : vector<16x16xf32>
    %30 = arith.negf %29 : vector<16x16xf32>
    %31 = math.exp %30 : vector<16x16xf32>
    %cst_21 = arith.constant 1.000000e+00 : f32
    %32 = vector.broadcast %cst_21 : f32 to vector<16x16xf32>
    %33 = arith.addf %32, %31 : vector<16x16xf32>
    %34 = arith.divf %32, %33 : vector<16x16xf32>
    %35 = arith.mulf %29, %34 : vector<16x16xf32>
    %36 = vector.shape_cast %35 : vector<16x16xf32> to vector<1x16x16xf32>
    %c0_i32_22 = arith.constant 0 : i32
    %37 = arith.cmpi ne, %arg1, %c0_i32_22 : i32
    %38 = arith.extui %37 : i1 to i32
    %39 = arith.sitofp %38 : i32 to f32
    %40 = vector.broadcast %39 : f32 to vector<1x16x16xf32>
    %41 = arith.mulf %36, %40 : vector<1x16x16xf32>
    %c0_23 = arith.constant 0 : index
    %c0_24 = arith.constant 0 : index
    %c0_25 = arith.constant 0 : index
    %42 = vector.load %arg12[%c0_23, %c0_24, %c0_25] : memref<18x16x16xf32, #tpu.memory_space<vmem>>, vector<1x16x16xf32>
    tpu.vector_store %arg12[%c0_23, %c0_24, %c0_25], %21 {strides = array<i32>} : memref<18x16x16xf32, #tpu.memory_space<vmem>>, vector<1x16x16xf32>,
    %43 = vector.shape_cast %1 : vector<16x16x4xf32> to vector<256x4xf32>
    %c0_26 = arith.constant 0 : index
    %c0_27 = arith.constant 0 : index
    %44 = vector.load %arg5[%c0_26, %c0_27] : memref<4x16xf32, #tpu.memory_space<vmem>>, vector<4x16xf32>
    %cst_28 = arith.constant dense<0.000000e+00> : vector<256x16xf32>
    %45 = tpu.matmul %43, %44, %cst_28 {dimension_numbers = #tpu.dot_dimension_numbers<[1], [0], [0], [1], [0, 0, 1, 1], [], []>} : vector<256x4xf32>, vector<4x16xf32>, vector<256x16xf32> -> vector<256x16xf32>
    %c0_29 = arith.constant 0 : index
    %c0_30 = arith.constant 0 : index
    %46 = vector.load %arg6[%c0_29, %c0_30] : memref<1x16xf32, #tpu.memory_space<vmem>>, vector<1x16xf32>
    %47 = vector.broadcast %46 : vector<1x16xf32> to vector<256x16xf32>
    %48 = arith.addf %45, %47 : vector<256x16xf32>
    %49 = arith.negf %48 : vector<256x16xf32>
    %50 = math.exp %49 : vector<256x16xf32>
    %cst_31 = arith.constant 1.000000e+00 : f32
    %51 = vector.broadcast %cst_31 : f32 to vector<256x16xf32>
    %52 = arith.addf %51, %50 : vector<256x16xf32>
    %53 = arith.divf %51, %52 : vector<256x16xf32>
    %54 = arith.mulf %48, %53 : vector<256x16xf32>
    %55 = vector.shape_cast %54 : vector<256x16xf32> to vector<16x16x16xf32>
    %c1 = arith.constant 1 : index
    %c0_32 = arith.constant 0 : index
    %c0_33 = arith.constant 0 : index
    %56 = vector.load %arg12[%c1, %c0_32, %c0_33] : memref<18x16x16xf32, #tpu.memory_space<vmem>>, vector<16x16x16xf32>
    tpu.vector_store %arg12[%c1, %c0_32, %c0_33], %55 {strides = array<i32>} : memref<18x16x16xf32, #tpu.memory_space<vmem>>, vector<16x16x16xf32>,
    %c17 = arith.constant 17 : index
    %c0_34 = arith.constant 0 : index
    %c0_35 = arith.constant 0 : index
    %57 = vector.load %arg12[%c17, %c0_34, %c0_35] : memref<18x16x16xf32, #tpu.memory_space<vmem>>, vector<1x16x16xf32>
    tpu.vector_store %arg12[%c17, %c0_34, %c0_35], %41 {strides = array<i32>} : memref<18x16x16xf32, #tpu.memory_space<vmem>>, vector<1x16x16xf32>,
    %c0_36 = arith.constant 0 : index
    %c0_37 = arith.constant 0 : index
    %c0_38 = arith.constant 0 : index
    %58 = vector.load %arg12[%c0_36, %c0_37, %c0_38] : memref<18x16x16xf32, #tpu.memory_space<vmem>>, vector<18x16x16xf32>
    %c0_39 = arith.constant 0 : index
    %c0_40 = arith.constant 0 : index
    %59 = vector.load %arg7[%c0_39, %c0_40] : memref<9x16xf32, #tpu.memory_space<vmem>>, vector<9x16xf32>
    %60 = tpu.iota {dimensions = array<i32: 1>} : vector<1x16x1xi32>
    %c1_i32 = arith.constant 1 : i32
    %61 = tpu.dynamic_rotate %58 by %c1_i32 dim 1 : vector<18x16x16xf32>, i32 -> vector<18x16x16xf32>
    %c1_i32_41 = arith.constant 1 : i32
    %62 = vector.broadcast %c1_i32_41 : i32 to vector<1x16x1xi32>
    %63 = arith.cmpi sge, %60, %62 : vector<1x16x1xi32>
    %cst_42 = arith.constant 0.000000e+00 : f32
    %64 = vector.shape_cast %63 : vector<1x16x1xi1> to vector<1x16x1xi1>
    %65 = vector.broadcast %64 : vector<1x16x1xi1> to vector<18x16x16xi1>
    %66 = vector.broadcast %cst_42 : f32 to vector<18x16x16xf32>
    %67 = arith.select %65, %61, %66 : vector<18x16x16xi1>, vector<18x16x16xf32>
    %68 = vector.extract_strided_slice %67 {offsets = [0, 0, 0], sizes = [16, 16, 16], strides = [1, 1, 1]} : vector<18x16x16xf32> to vector<16x16x16xf32>
    %69 = vector.extract_strided_slice %59 {offsets = [0, 0], sizes = [1, 16], strides = [1, 1]} : vector<9x16xf32> to vector<1x16xf32>
    %70 = vector.shape_cast %69 : vector<1x16xf32> to vector<1x1x16xf32>
    %71 = vector.broadcast %70 : vector<1x1x16xf32> to vector<16x16x16xf32>
    %72 = arith.mulf %68, %71 : vector<16x16x16xf32>
    %73 = vector.extract_strided_slice %67 {offsets = [1, 0, 0], sizes = [16, 16, 16], strides = [1, 1, 1]} : vector<18x16x16xf32> to vector<16x16x16xf32>
    %74 = vector.extract_strided_slice %59 {offsets = [3, 0], sizes = [1, 16], strides = [1, 1]} : vector<9x16xf32> to vector<1x16xf32>
    %75 = vector.shape_cast %74 : vector<1x16xf32> to vector<1x1x16xf32>
    %76 = vector.broadcast %75 : vector<1x1x16xf32> to vector<16x16x16xf32>
    %77 = arith.mulf %73, %76 : vector<16x16x16xf32>
    %78 = arith.addf %72, %77 : vector<16x16x16xf32>
    %79 = vector.extract_strided_slice %67 {offsets = [2, 0, 0], sizes = [16, 16, 16], strides = [1, 1, 1]} : vector<18x16x16xf32> to vector<16x16x16xf32>
    %80 = vector.extract_strided_slice %59 {offsets = [6, 0], sizes = [1, 16], strides = [1, 1]} : vector<9x16xf32> to vector<1x16xf32>
    %81 = vector.shape_cast %80 : vector<1x16xf32> to vector<1x1x16xf32>
    %82 = vector.broadcast %81 : vector<1x1x16xf32> to vector<16x16x16xf32>
    %83 = arith.mulf %79, %82 : vector<16x16x16xf32>
    %84 = arith.addf %78, %83 : vector<16x16x16xf32>
    %85 = vector.extract_strided_slice %58 {offsets = [0, 0, 0], sizes = [16, 16, 16], strides = [1, 1, 1]} : vector<18x16x16xf32> to vector<16x16x16xf32>
    %86 = vector.extract_strided_slice %59 {offsets = [1, 0], sizes = [1, 16], strides = [1, 1]} : vector<9x16xf32> to vector<1x16xf32>
    %87 = vector.shape_cast %86 : vector<1x16xf32> to vector<1x1x16xf32>
    %88 = vector.broadcast %87 : vector<1x1x16xf32> to vector<16x16x16xf32>
    %89 = arith.mulf %85, %88 : vector<16x16x16xf32>
    %90 = arith.addf %84, %89 : vector<16x16x16xf32>
    %91 = vector.extract_strided_slice %58 {offsets = [1, 0, 0], sizes = [16, 16, 16], strides = [1, 1, 1]} : vector<18x16x16xf32> to vector<16x16x16xf32>
    %92 = vector.extract_strided_slice %59 {offsets = [4, 0], sizes = [1, 16], strides = [1, 1]} : vector<9x16xf32> to vector<1x16xf32>
    %93 = vector.shape_cast %92 : vector<1x16xf32> to vector<1x1x16xf32>
    %94 = vector.broadcast %93 : vector<1x1x16xf32> to vector<16x16x16xf32>
    %95 = arith.mulf %91, %94 : vector<16x16x16xf32>
    %96 = arith.addf %90, %95 : vector<16x16x16xf32>
    %97 = vector.extract_strided_slice %58 {offsets = [2, 0, 0], sizes = [16, 16, 16], strides = [1, 1, 1]} : vector<18x16x16xf32> to vector<16x16x16xf32>
    %98 = vector.extract_strided_slice %59 {offsets = [7, 0], sizes = [1, 16], strides = [1, 1]} : vector<9x16xf32> to vector<1x16xf32>
    %99 = vector.shape_cast %98 : vector<1x16xf32> to vector<1x1x16xf32>
    %100 = vector.broadcast %99 : vector<1x1x16xf32> to vector<16x16x16xf32>
    %101 = arith.mulf %97, %100 : vector<16x16x16xf32>
    %102 = arith.addf %96, %101 : vector<16x16x16xf32>
    %c15_i32 = arith.constant 15 : i32
    %103 = tpu.dynamic_rotate %58 by %c15_i32 dim 1 : vector<18x16x16xf32>, i32 -> vector<18x16x16xf32>
    %c14_i32 = arith.constant 14 : i32
    %104 = vector.broadcast %c14_i32 : i32 to vector<1x16x1xi32>
    %105 = arith.cmpi sle, %60, %104 : vector<1x16x1xi32>
    %cst_43 = arith.constant 0.000000e+00 : f32
    %106 = vector.shape_cast %105 : vector<1x16x1xi1> to vector<1x16x1xi1>
    %107 = vector.broadcast %106 : vector<1x16x1xi1> to vector<18x16x16xi1>
    %108 = vector.broadcast %cst_43 : f32 to vector<18x16x16xf32>
    %109 = arith.select %107, %103, %108 : vector<18x16x16xi1>, vector<18x16x16xf32>
    %110 = vector.extract_strided_slice %109 {offsets = [0, 0, 0], sizes = [16, 16, 16], strides = [1, 1, 1]} : vector<18x16x16xf32> to vector<16x16x16xf32>
    %111 = vector.extract_strided_slice %59 {offsets = [2, 0], sizes = [1, 16], strides = [1, 1]} : vector<9x16xf32> to vector<1x16xf32>
    %112 = vector.shape_cast %111 : vector<1x16xf32> to vector<1x1x16xf32>
    %113 = vector.broadcast %112 : vector<1x1x16xf32> to vector<16x16x16xf32>
    %114 = arith.mulf %110, %113 : vector<16x16x16xf32>
    %115 = arith.addf %102, %114 : vector<16x16x16xf32>
    %116 = vector.extract_strided_slice %109 {offsets = [1, 0, 0], sizes = [16, 16, 16], strides = [1, 1, 1]} : vector<18x16x16xf32> to vector<16x16x16xf32>
    %117 = vector.extract_strided_slice %59 {offsets = [5, 0], sizes = [1, 16], strides = [1, 1]} : vector<9x16xf32> to vector<1x16xf32>
    %118 = vector.shape_cast %117 : vector<1x16xf32> to vector<1x1x16xf32>
    %119 = vector.broadcast %118 : vector<1x1x16xf32> to vector<16x16x16xf32>
    %120 = arith.mulf %116, %119 : vector<16x16x16xf32>
    %121 = arith.addf %115, %120 : vector<16x16x16xf32>
    %122 = vector.extract_strided_slice %109 {offsets = [2, 0, 0], sizes = [16, 16, 16], strides = [1, 1, 1]} : vector<18x16x16xf32> to vector<16x16x16xf32>
    %123 = vector.extract_strided_slice %59 {offsets = [8, 0], sizes = [1, 16], strides = [1, 1]} : vector<9x16xf32> to vector<1x16xf32>
    %124 = vector.shape_cast %123 : vector<1x16xf32> to vector<1x1x16xf32>
    %125 = vector.broadcast %124 : vector<1x1x16xf32> to vector<16x16x16xf32>
    %126 = arith.mulf %122, %125 : vector<16x16x16xf32>
    %127 = arith.addf %121, %126 : vector<16x16x16xf32>
    %c0_44 = arith.constant 0 : index
    %c0_45 = arith.constant 0 : index
    %128 = vector.load %arg8[%c0_44, %c0_45] : memref<1x16xf32, #tpu.memory_space<vmem>>, vector<1x16xf32>
    %129 = vector.shape_cast %128 : vector<1x16xf32> to vector<1x1x16xf32>
    %130 = vector.broadcast %129 : vector<1x1x16xf32> to vector<16x16x16xf32>
    %131 = arith.addf %127, %130 : vector<16x16x16xf32>
    %132 = arith.negf %131 : vector<16x16x16xf32>
    %133 = math.exp %132 : vector<16x16x16xf32>
    %cst_46 = arith.constant 1.000000e+00 : f32
    %134 = vector.broadcast %cst_46 : f32 to vector<16x16x16xf32>
    %135 = arith.addf %134, %133 : vector<16x16x16xf32>
    %136 = arith.divf %134, %135 : vector<16x16x16xf32>
    %137 = arith.mulf %131, %136 : vector<16x16x16xf32>
    %138 = vector.shape_cast %137 : vector<16x16x16xf32> to vector<256x16xf32>
    %c0_47 = arith.constant 0 : index
    %c0_48 = arith.constant 0 : index
    %139 = vector.load %arg9[%c0_47, %c0_48] : memref<16x4xf32, #tpu.memory_space<vmem>>, vector<16x4xf32>
    %cst_49 = arith.constant dense<0.000000e+00> : vector<256x4xf32>
    %140 = tpu.matmul %138, %139, %cst_49 {dimension_numbers = #tpu.dot_dimension_numbers<[1], [0], [0], [1], [0, 0, 1, 1], [], []>} : vector<256x16xf32>, vector<16x4xf32>, vector<256x4xf32> -> vector<256x4xf32>
    %c0_50 = arith.constant 0 : index
    %c0_51 = arith.constant 0 : index
    %141 = vector.load %arg10[%c0_50, %c0_51] : memref<1x4xf32, #tpu.memory_space<vmem>>, vector<1x4xf32>
    %142 = vector.broadcast %141 : vector<1x4xf32> to vector<256x4xf32>
    %143 = arith.addf %140, %142 : vector<256x4xf32>
    %144 = vector.shape_cast %143 : vector<256x4xf32> to vector<16x16x4xf32>
    %145 = arith.addf %144, %1 : vector<16x16x4xf32>
    %c0_52 = arith.constant 0 : index
    %c0_53 = arith.constant 0 : index
    %c0_54 = arith.constant 0 : index
    %c0_55 = arith.constant 0 : index
    %146 = vector.load %arg11[%c0_52, %c0_53, %c0_54, %c0_55] : memref<1x16x16x4xf32, #tpu.memory_space<vmem>>, vector<1x16x16x4xf32>
    %147 = vector.shape_cast %146 : vector<1x16x16x4xf32> to vector<16x16x4xf32>
    %148 = vector.shape_cast %145 : vector<16x16x4xf32> to vector<1x16x16x4xf32>
    tpu.vector_store %arg11[%c0_52, %c0_53, %c0_54, %c0_55], %148 {strides = array<i32>} : memref<1x16x16x4xf32, #tpu.memory_space<vmem>>, vector<1x16x16x4xf32>,
    return
  }
  func.func @transform_0(%arg0: i32, %arg1: i32) -> (i32, i32, i32, i32) {
    %c0_i32 = arith.constant 0 : i32
    %c0_i32_0 = arith.constant 0 : i32
    %c0_i32_1 = arith.constant 0 : i32
    return %arg0, %arg1, %c0_i32, %c0_i32_0 : i32, i32, i32, i32
  }
  func.func @transform_1(%arg0: i32, %arg1: i32) -> (i32, i32, i32, i32) {
    %c16_i32 = arith.constant 16 : i32
    %0 = arith.muli %arg1, %c16_i32 : i32
    %c1_i32 = arith.constant 1 : i32
    %1 = arith.subi %0, %c1_i32 : i32
    %c0_i32 = arith.constant 0 : i32
    %2 = arith.maxsi %1, %c0_i32 : i32
    %c0_i32_0 = arith.constant 0 : i32
    %c0_i32_1 = arith.constant 0 : i32
    %c0_i32_2 = arith.constant 0 : i32
    return %arg0, %2, %c0_i32_0, %c0_i32_1 : i32, i32, i32, i32
  }
  func.func @transform_2(%arg0: i32, %arg1: i32) -> (i32, i32, i32, i32) {
    %c16_i32 = arith.constant 16 : i32
    %0 = arith.muli %arg1, %c16_i32 : i32
    %c16_i32_0 = arith.constant 16 : i32
    %1 = arith.addi %0, %c16_i32_0 : i32
    %c15_i32 = arith.constant 15 : i32
    %2 = arith.minsi %1, %c15_i32 : i32
    %c0_i32 = arith.constant 0 : i32
    %c0_i32_1 = arith.constant 0 : i32
    %c0_i32_2 = arith.constant 0 : i32
    return %arg0, %2, %c0_i32, %c0_i32_1 : i32, i32, i32, i32
  }
  func.func @transform_3(%arg0: i32, %arg1: i32) -> (i32, i32) {
    %c0_i32 = arith.constant 0 : i32
    %c0_i32_0 = arith.constant 0 : i32
    %c0_i32_1 = arith.constant 0 : i32
    return %c0_i32, %c0_i32_0 : i32, i32
  }
  func.func @transform_4(%arg0: i32, %arg1: i32) -> (i32, i32) {
    %c0_i32 = arith.constant 0 : i32
    %c0_i32_0 = arith.constant 0 : i32
    %c0_i32_1 = arith.constant 0 : i32
    return %c0_i32, %c0_i32_0 : i32, i32
  }
  func.func @transform_5(%arg0: i32, %arg1: i32) -> (i32, i32) {
    %c0_i32 = arith.constant 0 : i32
    %c0_i32_0 = arith.constant 0 : i32
    %c0_i32_1 = arith.constant 0 : i32
    return %c0_i32, %c0_i32_0 : i32, i32
  }
  func.func @transform_6(%arg0: i32, %arg1: i32) -> (i32, i32) {
    %c0_i32 = arith.constant 0 : i32
    %c0_i32_0 = arith.constant 0 : i32
    %c0_i32_1 = arith.constant 0 : i32
    return %c0_i32, %c0_i32_0 : i32, i32
  }
  func.func @transform_7(%arg0: i32, %arg1: i32) -> (i32, i32) {
    %c0_i32 = arith.constant 0 : i32
    %c0_i32_0 = arith.constant 0 : i32
    %c0_i32_1 = arith.constant 0 : i32
    return %c0_i32, %c0_i32_0 : i32, i32
  }
  func.func @transform_8(%arg0: i32, %arg1: i32) -> (i32, i32) {
    %c0_i32 = arith.constant 0 : i32
    %c0_i32_0 = arith.constant 0 : i32
    %c0_i32_1 = arith.constant 0 : i32
    return %c0_i32, %c0_i32_0 : i32, i32
  }
  func.func @transform_9(%arg0: i32, %arg1: i32) -> (i32, i32, i32, i32) {
    %c0_i32 = arith.constant 0 : i32
    %c0_i32_0 = arith.constant 0 : i32
    %c0_i32_1 = arith.constant 0 : i32
    return %arg0, %arg1, %c0_i32, %c0_i32_0 : i32, i32, i32, i32
  }
}

</mosaic_0001>

<bundles_post_ra>
// kernel: tpu_custom_call.1
= control target key start
LH: loop header
LB: loop body
LE: loop exit
PB: predicated region body
PF: predicated region fallthrough
CT: control target
= control target key end

     0   :  { %s3743_s30 = smov 0   ;;  %s3745_s10 = smov 0   ;;  %s5566_s0 = inlined_call_operand.vmem [shape: f32[2,16,16,4], index: 0, kind: input, shape index: {}]   ;;  %s5567_s1 = inlined_call_operand.vmem [shape: f32[2,16,16,4], index: 1, kind: input, shape index: {}]   ;;  %s5568_s2 = inlined_call_operand.vmem [shape: f32[2,16,16,4], index: 2, kind: input, shape index: {}]   ;;  %s5569_s3 = inlined_call_operand.vmem [shape: f32[4,16], index: 3, kind: input, shape index: {}]   ;;  %s5570_s4 = inlined_call_operand.vmem [shape: f32[1,16], index: 4, kind: input, shape index: {}]   ;;  %s5571_s5 = inlined_call_operand.vmem [shape: f32[9,16], index: 5, kind: input, shape index: {}]   ;;  %s5572_s6 = inlined_call_operand.vmem [shape: f32[1,16], index: 6, kind: input, shape index: {}]   ;;  %s5573_s7 = inlined_call_operand.vmem [shape: f32[16,4], index: 7, kind: input, shape index: {}]   ;;  %s5574_s8 = inlined_call_operand.vmem [shape: f32[1,4], index: 8, kind: input, shape index: {}]   ;;  %s5575_s9 = inlined_call_operand.vmem [shape: f32[2,16,16,4], index: 9, kind: output, shape index: {}]  }
   0x1   :  { %s3747_s11 = smov 0  }
   0x2 LB: > { %s31_s12 = sadd.s32 1, %s3687_s10  ;;  %p2993_p0 = scmp.ge.s32.totalorder %s3691_s11, 1  ;;  %s3691_s11 = sphi %s3747_s11, %s19_s11   ;;  %s3687_s10 = sphi %s3745_s10, %s5577_s10   ;;  %s3683_s30 = sphi %s3743_s30, %s5576_s30  }
   0x3   : > { %p33_p1 = scmp.ge.s32.totalorder %s31_s12, 2  ;;  %p373_p2 = scmp.lt.s32.totalorder %s3691_s11, 3 }
   0x5   : > { %s5579_s12 = smov (%p33_p1, %s31_s12), 0  ;;  %p374_p3 = pnand %p2993_p0, %p373_p2 }
   0x6   : > { %p446_p4 = scmp.lt.s32.totalorder (!%p374_p3), %s3683_s30, 1 }
   0x7   : > { %377 = sbr.rel (%p374_p3) target bundleno = 751 (0x2ef), region = 56 }
   0xc   : > { %v535_v0 = vld [vmem:[%s5569_s3] sm:$0xf]  ;;  %vm550_vm0 = vcmask 1043456   ;;  %s5581_s30 = smov (!%p446_p4, %s3683_s30), 1  ;;  %vm543_vm1 = vcmask 31744   ;;  %v2458_v38 = vld [vmem:[%s5573_s7 + $0x8] sm:$0xff] }
   0xd   : > { %3227 = vmatprep.subr.msk.mxu0 %vm550_vm0, %v535_v0  ;;  %v751_v1 = vld [vmem:[%s5569_s3] sm:$0xf]  ;;  %3232 = vmatprep.subr.msk.mxu1 %vm550_vm0, %v535_v0  ;;  %s3772_s17 = sshll.u32 %s5581_s30, 8  ;;  %vm748_vm2 = vcmask 130048  }
   0xe   : > { %3228 = vmatpush3.msk.msra.mxu0 %vm550_vm0, %v535_v0  ;;  %3233 = vmatpush3.msk.msra.mxu1 %vm550_vm0, %v535_v0  ;;  %s3778_s20 = scalar_lea.vmem %s5566_s0, %s3772_s17  ;;  %s468_s23 = scalar_lea.vmem %s5567_s1, %s3772_s17  ;;  %v2457_v39 = vld [vmem:[%s5573_s7] sm:$0xff] }
   0xf   : > { %3237 = vmatprep.subr.msk.mxu0 %vm550_vm0, %v751_v1  ;;  %v533_v2 = vld [vmem:[%s468_s23] sm:$0xff]  ;;  %v534_v3 = vld [vmem:[%s468_s23 + $0x8] sm:$0xff]  ;;  %s3151_s24 = sadd.s32 240, %s3772_s17  ;;  %v503_v6 = vld [vmem:[%s3778_s20 + $0x10] sm:$0xff]  ;;  %3287 = vmatprep.subr.mxu1 %v2458_v38  ;;  %s5424_s14 = scalar_lea.vmem %s5575_s9, %s3772_s17 }
  0x10   : > { %v501_v4 = vld [vmem:[%s3778_s20] sm:$0xff]  ;;  %3229 = vmatprep.mubr.msk.f32.mxu0 %vm543_vm1, %v533_v2  ;;  %s485_s27 = scalar_lea.vmem %s5568_s2, %s3151_s24  ;;  %v502_v5 = vld [vmem:[%s3778_s20 + $0x8] sm:$0xff]  ;;  %v504_v9 = vld [vmem:[%s3778_s20 + $0x18] sm:$0xff] }
  0x11   : > { %3230 = vmatmul.mubr.msk.f32.vlgmr.msra.gmra.mxu0 %vm543_vm1, %v534_v3  ;;  %v649_v7 = vld [vmem:[%s485_s27] sm:$0xff]  ;;  %v650_v8 = vld [vmem:[%s485_s27 + $0x8] sm:$0xff]  ;;  %v507_v12 = vld [vmem:[%s3778_s20 + $0x30] sm:$0xff] }
  0x12   : > { %3238 = vmatpush3.msk.msra.mxu0 %vm550_vm0, %v751_v1  ;;  %3239 = vmatprep.mubr.msk.f32.mxu0 %vm543_vm1, %v501_v4  ;;  %v505_v10 = vld [vmem:[%s3778_s20 + $0x20] sm:$0xff]  ;;  %v506_v11 = vld [vmem:[%s3778_s20 + $0x28] sm:$0xff]  ;;  %v508_v13 = vld [vmem:[%s3778_s20 + $0x38] sm:$0xff] }
  0x13   : > { %3234 = vmatprep.mubr.msk.f32.mxu1 %vm543_vm1, %v649_v7  ;;  %v509_v14 = vld [vmem:[%s3778_s20 + $0x40] sm:$0xff]  ;;  %v510_v15 = vld [vmem:[%s3778_s20 + $0x48] sm:$0xff]  ;;  %v511_v16 = vld [vmem:[%s3778_s20 + $0x50] sm:$0xff] }
  0x14   : > { %3235 = vmatmul.mubr.msk.f32.vlgmr.msra.gmra.mxu1 %vm543_vm1, %v650_v8  ;;  %v512_v17 = vld [vmem:[%s3778_s20 + $0x58] sm:$0xff]  ;;  %v513_v18 = vld [vmem:[%s3778_s20 + $0x60] sm:$0xff]  ;;  %v514_v19 = vld [vmem:[%s3778_s20 + $0x68] sm:$0xff] }
  0x15   : > { %3240 = vmatmul.mubr.msk.f32.vlgmr.msra.gmra.mxu0 %vm543_vm1, %v502_v5  ;;  %v515_v20 = vld [vmem:[%s3778_s20 + $0x70] sm:$0xff]  ;;  %v516_v21 = vld [vmem:[%s3778_s20 + $0x78] sm:$0xff]  ;;  %v517_v22 = vld [vmem:[%s3778_s20 + $0x80] sm:$0xff]  ;;  %3288 = vmatpush3.msra.mxu1 %v2458_v38 }
  0x16   : > { %3242 = vmatprep.mubr.msk.f32.mxu0 %vm543_vm1, %v503_v6  ;;  %v518_v23 = vld [vmem:[%s3778_s20 + $0x88] sm:$0xff]  ;;  %v519_v24 = vld [vmem:[%s3778_s20 + $0x90] sm:$0xff]  ;;  %v520_v25 = vld [vmem:[%s3778_s20 + $0x98] sm:$0xff]  ;;  %3289 = vmatprep.subr.mxu1 %v2457_v39 }
  0x17   : > { %v521_v26 = vld [vmem:[%s3778_s20 + $0xa0] sm:$0xff]  ;;  %v522_v27 = vld [vmem:[%s3778_s20 + $0xa8] sm:$0xff]  ;;  %v523_v28 = vld [vmem:[%s3778_s20 + $0xb0] sm:$0xff]  ;;  %3290 = vmatpush3.msra.mxu1 %v2457_v39 }
  0x18   : > { %v524_v29 = vld [vmem:[%s3778_s20 + $0xb8] sm:$0xff]  ;;  %v525_v30 = vld [vmem:[%s3778_s20 + $0xc0] sm:$0xff]  ;;  %v526_v31 = vld [vmem:[%s3778_s20 + $0xc8] sm:$0xff] }
  0x19   : > { %3243 = vmatmul.mubr.msk.f32.gmra.mxu0 %vm543_vm1, %v504_v9  ;;  %v527_v32 = vld [vmem:[%s3778_s20 + $0xd0] sm:$0xff]  ;;  %v528_v33 = vld [vmem:[%s3778_s20 + $0xd8] sm:$0xff]  ;;  %v529_v34 = vld [vmem:[%s3778_s20 + $0xe0] sm:$0xff] }
  0x1a   : > { %3245 = vmatprep.mubr.msk.f32.mxu0 %vm543_vm1, %v505_v10  ;;  %v530_v35 = vld [vmem:[%s3778_s20 + $0xe8] sm:$0xff]  ;;  %v531_v36 = vld [vmem:[%s3778_s20 + $0xf0] sm:$0xff]  ;;  %v532_v37 = vld [vmem:[%s3778_s20 + $0xf8] sm:$0xff] }
  0x1b   : > { %v3866_v40 = vld [vmem:[%s5570_s4] ss:$0 sm:$0xff] }
  0x1d   : > { %3246 = vmatmul.mubr.msk.f32.gmra.mxu0 %vm543_vm1, %v506_v11 }
  0x1e   : > { %3248 = vmatprep.mubr.msk.f32.mxu0 %vm543_vm1, %v507_v12 }
  0x21   : > { %3249 = vmatmul.mubr.msk.f32.gmra.mxu0 %vm543_vm1, %v508_v13 }
  0x22   : > { %3251 = vmatprep.mubr.msk.f32.mxu0 %vm543_vm1, %v509_v14 }
  0x25   : > { %3252 = vmatmul.mubr.msk.f32.gmra.mxu0 %vm543_vm1, %v510_v15 }
  0x26   : > { %3254 = vmatprep.mubr.msk.f32.mxu0 %vm543_vm1, %v511_v16 }
  0x29   : > { %3255 = vmatmul.mubr.msk.f32.gmra.mxu0 %vm543_vm1, %v512_v17 }
  0x2a   : > { %3257 = vmatprep.mubr.msk.f32.mxu0 %vm543_vm1, %v513_v18 }
  0x2d   : > { %3258 = vmatmul.mubr.msk.f32.gmra.mxu0 %vm543_vm1, %v514_v19 }
  0x2e   : > { %3260 = vmatprep.mubr.msk.f32.mxu0 %vm543_vm1, %v515_v20 }
  0x31   : > { %3261 = vmatmul.mubr.msk.f32.gmra.mxu0 %vm543_vm1, %v516_v21  ;;  %v1381_v21 = vlaneseq }
  0x32   : > { %3263 = vmatprep.mubr.msk.f32.mxu0 %vm543_vm1, %v517_v22 }
  0x35   : > { %3264 = vmatmul.mubr.msk.f32.gmra.mxu0 %vm543_vm1, %v518_v23 }
  0x36   : > { %3266 = vmatprep.mubr.msk.f32.mxu0 %vm543_vm1, %v519_v24 }
  0x39   : > { %3267 = vmatmul.mubr.msk.f32.gmra.mxu0 %vm543_vm1, %v520_v25 }
  0x3a   : > { %3269 = vmatprep.mubr.msk.f32.mxu0 %vm543_vm1, %v521_v26 }
  0x3d   : > { %3270 = vmatmul.mubr.msk.f32.gmra.mxu0 %vm543_vm1, %v522_v27 }
  0x3e   : > { %3272 = vmatprep.mubr.msk.f32.mxu0 %vm543_vm1, %v523_v28 }
  0x41   : > { %3273 = vmatmul.mubr.msk.f32.gmra.mxu0 %vm543_vm1, %v524_v29 }
  0x42   : > { %3275 = vmatprep.mubr.msk.f32.mxu0 %vm543_vm1, %v525_v30 }
  0x45   : > { %3276 = vmatmul.mubr.msk.f32.gmra.mxu0 %vm543_vm1, %v526_v31 }
  0x46   : > { %3278 = vmatprep.mubr.msk.f32.mxu0 %vm543_vm1, %v527_v32  ;;  %v3927_v32 = vshrl.u32 %v1381_v21, 7 }
  0x48   : > { %v1741_v21 = vsub.s32 4, %v3927_v32  ;;  %vm1420_vm3 = vcmp.lt.s32.totalorder %v3927_v32, 1  ;;  %vm1457_vm4 = vcmp.ge.s32.totalorder %v3927_v32, 1  ;;  %vm1911_vm5 = vcmp.lt.s32.totalorder %v3927_v32, 7 }
  0x49   : > { %3279 = vmatmul.mubr.msk.f32.gmra.mxu0 %vm543_vm1, %v528_v33 }
  0x4a   : > { %3281 = vmatprep.mubr.msk.f32.mxu0 %vm543_vm1, %v529_v34 }
  0x4d   : > { %3282 = vmatmul.mubr.msk.f32.gmra.mxu0 %vm543_vm1, %v530_v35 }
  0x4e   : > { %3284 = vmatprep.mubr.msk.f32.mxu0 %vm543_vm1, %v531_v36 }
  0x51   : > { %3285 = vmatmul.mubr.msk.f32.gmra.mxu0 %vm543_vm1, %v532_v37 }
  0xd1   : > { %v3231_v41 = vpop.f32.mrf.mxu0 }
  0xd2   : > { %v3869_v42 = vadd.f32 %v3231_v41, %v3866_v40 }
  0xd3   : > { %v620_v43 = vpop.f32.mrf.mxu0 }
  0xd4   : > { %v3007_v44 = vmul.f32 -1.442695, %v3869_v42  ;;  %v3873_v45 = vadd.f32 %v3866_v40, %v620_v43  ;;  %v3236_v49 = vpop.f32.mrf.mxu1 }
  0xd5   : > { %v3241_v46 = vpop.f32.mrf.mxu0  ;;  %v3884_v54 = vadd.f32 %v3236_v49, %v3866_v40  ;;  %v1537_v49 = vsub.s32 3, %v3927_v32 }
  0xd6   : > { %3363 = vpow2.f32 %v3007_v44  ;;  %v3006_v47 = vmul.f32 -1.442695, %v3873_v45  ;;  %v3877_v48 = vadd.f32 %v3241_v46, %v3866_v40  ;;  %v723_v57 = vpop.f32.mrf.mxu1 }
  0xd7   : > { %v924_v50 = vpop.f32.mrf.mxu0  ;;  %v3012_v62 = vmul.f32 -1.442695, %v3884_v54  ;;  %v3896_v63 = vadd.f32 %v3866_v40, %v723_v57  ;;  %v3947_v57 = vld [vmem:[%s5571_s5] sm:$0xff] }
  0xd8   : > { %3365 = vpow2.f32 %v3006_v47  ;;  %v3048_v51 = vmul.f32 -1.442695, %v3877_v48  ;;  %v3881_v52 = vadd.f32 %v3866_v40, %v924_v50  ;;  %v1501_v47 = vsub.s32 0, %v3927_v32 }
  0xd9   : > { %v3244_v53 = vpop.f32.mrf.mxu0  ;;  %v3011_v6 = vmul.f32 -1.442695, %v3896_v63  ;;  %v1673_v50 = vsub.s32 1, %v3927_v32 }
  0xda   : > { %3367 = vpow2.f32 %v3048_v51  ;;  %v3047_v55 = vmul.f32 -1.442695, %v3881_v52  ;;  %v3888_v56 = vadd.f32 %v3244_v53, %v3866_v40 }
  0xdb   : > { %v934_v58 = vpop.f32.mrf.mxu0 }
  0xdc   : > { %3369 = vpow2.f32 %v3047_v55  ;;  %v3050_v59 = vmul.f32 -1.442695, %v3888_v56  ;;  %v3892_v60 = vadd.f32 %v3866_v40, %v934_v58 }
  0xdd   : > { %v3247_v61 = vpop.f32.mrf.mxu0 }
  0xde   : > { %3371 = vpow2.f32 %v3050_v59  ;;  %v3049_v0 = vmul.f32 -1.442695, %v3892_v60  ;;  %v3900_v1 = vadd.f32 %v3247_v61, %v3866_v40 }
  0xdf   : > { %v944_v2 = vpop.f32.mrf.mxu0 }
  0xe0   : > { %3373 = vpow2.f32 %v3049_v0  ;;  %v3052_v3 = vmul.f32 -1.442695, %v3900_v1  ;;  %v3904_v4 = vadd.f32 %v3866_v40, %v944_v2 }
  0xe1   : > { %v3250_v5 = vpop.f32.mrf.mxu0  ;;  %3375 = vpow2.f32 %v3012_v62 }
  0xe2   : > { %3377 = vpow2.f32 %v3052_v3  ;;  %v3051_v7 = vmul.f32 -1.442695, %v3904_v4  ;;  %v3909_v8 = vadd.f32 %v3250_v5, %v3866_v40 }
  0xe3   : > { %v3364_v9 = vpop.eup %3363  ;;  %v954_v10 = vpop.f32.mrf.mxu0 }
  0xe4   : > { %v636_v11 = vadd.f32 1.0, %v3364_v9  ;;  %3379 = vpow2.f32 %v3051_v7  ;;  %v3054_v12 = vmul.f32 -1.442695, %v3909_v8  ;;  %v3913_v13 = vadd.f32 %v3866_v40, %v954_v10 }
  0xe5   : > { %v3366_v14 = vpop.eup %3365  ;;  %v3253_v15 = vpop.f32.mrf.mxu0  ;;  %3381 = vpow2.f32 %v3011_v6  ;;  %v3954_v7 = vrot.slane %v3947_v57, %v1501_v47  ;;  %v3957_v9 = vrot.slane %v3947_v57, %v1537_v49  ;;  %v3960_v10 = vrot.slane %v3947_v57, %v1673_v50 }
  0xe6   : > { %3383 = vrcp.f32 %v636_v11  ;;  %v635_v16 = vadd.f32 1.0, %v3366_v14  ;;  %v3053_v17 = vmul.f32 -1.442695, %v3913_v13  ;;  %v3917_v18 = vadd.f32 %v3253_v15, %v3866_v40 }
  0xe7   : > { %v3368_v19 = vpop.eup %3367  ;;  %3385 = vpow2.f32 %v3054_v12  ;;  %v964_v20 = vpop.f32.mrf.mxu0 }
  0xe8   : > { %3387 = vrcp.f32 %v635_v16  ;;  %v1180_v22 = vadd.f32 1.0, %v3368_v19  ;;  %v3056_v23 = vmul.f32 -1.442695, %v3917_v18  ;;  %v3921_v24 = vadd.f32 %v3866_v40, %v964_v20 }
  0xe9   : > { %v3370_v25 = vpop.eup %3369  ;;  %3389 = vpow2.f32 %v3053_v17  ;;  %v3256_v26 = vpop.f32.mrf.mxu0  ;;  %v1605_v20 = vsub.s32 6, %v3927_v32 }
  0xea   : > { %3391 = vrcp.f32 %v1180_v22  ;;  %v1179_v27 = vadd.f32 1.0, %v3370_v25  ;;  %v3055_v28 = vmul.f32 -1.442695, %v3921_v24  ;;  %v3925_v29 = vadd.f32 %v3256_v26, %v3866_v40 }
  0xeb   : > { %v3372_v30 = vpop.eup %3371  ;;  %3393 = vpow2.f32 %v3056_v23  ;;  %v974_v31 = vpop.f32.mrf.mxu0 }
  0xec   : > { %3395 = vrcp.f32 %v1179_v27  ;;  %v1182_v33 = vadd.f32 1.0, %v3372_v30  ;;  %v3058_v34 = vmul.f32 -1.442695, %v3925_v29  ;;  %v3931_v35 = vadd.f32 %v3866_v40, %v974_v31 }
  0xed   : > { %v3374_v36 = vpop.eup %3373  ;;  %3397 = vpow2.f32 %v3055_v28  ;;  %v3259_v37 = vpop.f32.mrf.mxu0 }
  0xee   : > { %v3376_v38 = vpop.eup %3375  ;;  %3399 = vrcp.f32 %v1182_v33  ;;  %v1181_v39 = vadd.f32 1.0, %v3374_v36  ;;  %v3057_v41 = vmul.f32 -1.442695, %v3931_v35  ;;  %v3935_v43 = vadd.f32 %v3259_v37, %v3866_v40 }
  0xef   : > { %v3378_v44 = vpop.eup %3377  ;;  %3401 = vpow2.f32 %v3058_v34  ;;  %v984_v46 = vpop.f32.mrf.mxu0  ;;  %v739_v59 = vadd.f32 1.0, %v3376_v38 }
  0xf0   : > { %3403 = vrcp.f32 %v1181_v39  ;;  %v1184_v51 = vadd.f32 1.0, %v3378_v44  ;;  %v3060_v53 = vmul.f32 -1.442695, %v3935_v43  ;;  %v3942_v55 = vadd.f32 %v3866_v40, %v984_v46 }
  0xf1   : > { %v3380_v58 = vpop.eup %3379  ;;  %3405 = vpow2.f32 %v3057_v41  ;;  %v3262_v61 = vpop.f32.mrf.mxu0  ;;  %v3980_v41 = vrot.slane %v3947_v57, %v1741_v21  ;;  %v1809_v44 = vsub.s32 7, %v3927_v32 }
  0xf2   : > { %v3382_v62 = vpop.eup %3381  ;;  %3407 = vrcp.f32 %v1184_v51  ;;  %v1183_v0 = vadd.f32 1.0, %v3380_v58  ;;  %v3059_v2 = vmul.f32 -1.442695, %v3942_v55  ;;  %v3951_v3 = vadd.f32 %v3262_v61, %v3866_v40 }
  0xf3   : > { %v3384_v5 = vpop.eup %3383  ;;  %3409 = vpow2.f32 %v3060_v53  ;;  %v994_v6 = vpop.f32.mrf.mxu0  ;;  %v3991_v58 = vrot.slane %v3947_v57, %v1605_v20 }
  0xf4   : > { %v3386_v11 = vpop.eup %3385  ;;  %v642_v12 = vmul.f32 %v3384_v5, %v3869_v42  ;;  %3411 = vrcp.f32 %v1183_v0  ;;  %v3062_v14 = vmul.f32 -1.442695, %v3951_v3  ;;  %v3965_v15 = vadd.f32 %v3866_v40, %v994_v6 }
  0xf5   : > { %v3388_v16 = vpop.eup %3387  ;;  %v1186_v17 = vadd.f32 1.0, %v3386_v11  ;;  %3413 = vpow2.f32 %v3059_v2  ;;  %v3265_v19 = vpop.f32.mrf.mxu0  ;;  %v738_v42 = vadd.f32 1.0, %v3382_v62  ;;  %v4001_v11 = vrot.slane %v3947_v57, %v1809_v44 }
  0xf6   : > { %v3390_v22 = vpop.eup %3389  ;;  %v648_v23 = vmul.f32 0.0, %v642_v12  ;;  %v641_v25 = vmul.f32 %v3388_v16, %v3873_v45  ;;  %3415 = vrcp.f32 %v739_v59  ;;  %v3061_v28 = vmul.f32 -1.442695, %v3965_v15 }
  0xf7   : > { %v3392_v26 = vpop.eup %3391  ;;  %3417 = vrcp.f32 %v1186_v17  ;;  %v1185_v27 = vadd.f32 1.0, %v3390_v22  ;;  %v3972_v30 = vadd.f32 %v3265_v19, %v3866_v40  ;;  %v1004_v31 = vpop.f32.mrf.mxu0  ;;  %v1992_v59 = vsub.s32 2, %v3927_v32 }
  0xf8   : > { %v3394_v33 = vpop.eup %3393  ;;  %750 = vst.msk [vmem:[#allocation2 + $0x8] sm:$0xff] %vm748_vm2, %v648_v23  ;;  %v647_v34 = vmul.f32 0.0, %v641_v25  ;;  %v1276_v36 = vmul.f32 %v3392_v26, %v3877_v48  ;;  %3419 = vpow2.f32 %v3062_v14  ;;  %v3977_v45 = vadd.f32 %v3866_v40, %v1004_v31 }
  0xf9   : > { %v3396_v37 = vpop.eup %3395  ;;  %3421 = vrcp.f32 %v1185_v27  ;;  %v1188_v38 = vadd.f32 1.0, %v3394_v33  ;;  %v3268_v39 = vpop.f32.mrf.mxu0  ;;  %v3064_v47 = vmul.f32 -1.442695, %v3972_v30  ;;  %v2060_v12 = vsub.s32 5, %v3927_v32 }
  0xfa   : > { %v3398_v46 = vpop.eup %3397  ;;  %749 = vst.msk [vmem:[#allocation2] sm:$0xff] %vm748_vm2, %v647_v34  ;;  %1309 = vst.msk [vmem:[#allocation2 + $0x18] sm:$0xff] %vm748_vm2, %v1276_v36  ;;  %v1275_v48 = vmul.f32 %v3396_v37, %v3881_v52  ;;  %3423 = vrcp.f32 %v738_v42  ;;  %v3988_v49 = vadd.f32 %v3268_v39, %v3866_v40  ;;  %v3063_v62 = vmul.f32 -1.442695, %v3977_v45 }
  0xfb   : > { %v3400_v50 = vpop.eup %3399  ;;  %3425 = vrcp.f32 %v1188_v38  ;;  %v1187_v51 = vadd.f32 1.0, %v3398_v46  ;;  %v1014_v53 = vpop.f32.mrf.mxu0  ;;  %v4014_v23 = vrot.slane %v3947_v57, %v1992_v59  ;;  %v4017_v25 = vadd.s32 8, %v3927_v32 }
  0xfc   : > { %v3402_v61 = vpop.eup %3401  ;;  %1308 = vst.msk [vmem:[#allocation2 + $0x10] sm:$0xff] %vm748_vm2, %v1275_v48  ;;  %v1278_v52 = vmul.f32 %v3400_v50, %v3888_v56  ;;  %3427 = vpow2.f32 %v3061_v28  ;;  %v3998_v0 = vadd.f32 %v3866_v40, %v1014_v53  ;;  %v3066_v16 = vmul.f32 -1.442695, %v3988_v49 }
  0xfd   : > { %v3404_v2 = vpop.eup %3403  ;;  %3429 = vrcp.f32 %v1187_v51  ;;  %v1190_v5 = vadd.f32 1.0, %v3402_v61  ;;  %v3271_v6 = vpop.f32.mrf.mxu0  ;;  %v4031_v38 = vrot.slane %v3947_v57, %v2060_v12  ;;  %vm1949_vm6 = vcmp.le.s32.totalorder %v4017_v25, 14 }
  0xfe   : > { %v3406_v14 = vpop.eup %3405  ;;  %1311 = vst.msk [vmem:[#allocation2 + $0x28] sm:$0xff] %vm748_vm2, %v1278_v52  ;;  %v1277_v56 = vmul.f32 %v3404_v2, %v3892_v60  ;;  %3431 = vpow2.f32 %v3064_v47  ;;  %v4008_v17 = vadd.f32 %v3271_v6, %v3866_v40  ;;  %v3065_v26 = vmul.f32 -1.442695, %v3998_v0 }
  0xff   : > { %v3408_v19 = vpop.eup %3407  ;;  %3433 = vrcp.f32 %v1190_v5  ;;  %v1189_v20 = vadd.f32 1.0, %v3406_v14  ;;  %v1024_v21 = vpop.f32.mrf.mxu0  ;;  %v4011_v22 = vld [vmem:[#allocation2 + $0x8] sm:$0xff] }
 0x100   : > { %v3410_v60 = vpop.eup %3409  ;;  %1310 = vst.msk [vmem:[#allocation2 + $0x20] sm:$0xff] %vm748_vm2, %v1277_v56  ;;  %v1280_v42 = vmul.f32 %v3408_v19, %v3900_v1  ;;  %3435 = vpow2.f32 %v3063_v62  ;;  %v4023_v27 = vadd.f32 %v3866_v40, %v1024_v21  ;;  %v3068_v33 = vmul.f32 -1.442695, %v4008_v17 }
 0x101   : > { %v3412_v28 = vpop.eup %3411  ;;  %3437 = vrcp.f32 %v1189_v20  ;;  %v1192_v31 = vadd.f32 1.0, %v3410_v60  ;;  %v3274_v34 = vpop.f32.mrf.mxu0  ;;  %v4026_v36 = vld [vmem:[#allocation2] sm:$0xff]  ;;  %v4028_v37 = vld [vmem:[#allocation2 + $0x18] sm:$0xff]  ;;  %v1402_v46 = vrot.slane %v4011_v22, 7 }
 0x102   : > { %v3414_v1 = vpop.eup %3413  ;;  %1313 = vst.msk [vmem:[#allocation2 + $0x38] sm:$0xff] %vm748_vm2, %v1280_v42  ;;  %v1279_v39 = vmul.f32 %v3412_v28, %v3904_v4  ;;  %3439 = vpow2.f32 %v3066_v16  ;;  %v4036_v44 = vadd.f32 %v3274_v34, %v3866_v40  ;;  %v3067_v50 = vmul.f32 -1.442695, %v4023_v27 }
 0x103   : > { %v3416_v48 = vpop.eup %3415  ;;  %3441 = vrcp.f32 %v1192_v31  ;;  %v1191_v47 = vadd.f32 1.0, %v3414_v1  ;;  %v1034_v57 = vpop.f32.mrf.mxu0  ;;  %v4041_v51 = vld [vmem:[#allocation2 + $0x10] sm:$0xff]  ;;  %v1384_v53 = vrot.slane %v4026_v36, 7  ;;  %v1403_v52 = vrot.slane %v4028_v37, 7 }
 0x104   : > { %v3418_v59 = vpop.eup %3417  ;;  %1312 = vst.msk [vmem:[#allocation2 + $0x30] sm:$0xff] %vm748_vm2, %v1279_v39  ;;  %v745_v4 = vmul.f32 %v3416_v48, %v3884_v54  ;;  %3443 = vpow2.f32 %v3065_v26  ;;  %v4047_v61 = vadd.f32 %v3866_v40, %v1034_v57  ;;  %v3070_v5 = vmul.f32 -1.442695, %v4036_v44 }
 0x105   : > { %v3420_v62 = vpop.eup %3419  ;;  %v1282_v2 = vmul.f32 %v3418_v59, %v3909_v8  ;;  %3445 = vrcp.f32 %v1191_v47  ;;  %v3277_v6 = vpop.f32.mrf.mxu0  ;;  %v4052_v12 = vld [vmem:[#allocation2 + $0x28] sm:$0xff]  ;;  %v1385_v14 = vrot.slane %v4041_v51, 7 }
 0x106   : > { %v3422_v56 = vpop.eup %3421  ;;  %v747_v16 = vmul.f32 0.0, %v745_v4  ;;  %v1194_v54 = vadd.f32 1.0, %v3420_v62  ;;  %3447 = vpow2.f32 %v3068_v33  ;;  %v3069_v19 = vmul.f32 -1.442695, %v4047_v61 }
 0x107   : > { %v3424_v20 = vpop.eup %3423  ;;  %1315 = vst.msk [vmem:[#allocation2 + $0x48] sm:$0xff] %vm748_vm2, %v1282_v2  ;;  %v1281_v21 = vmul.f32 %v3422_v56, %v3913_v13  ;;  %3449 = vpow2.f32 %v3067_v50  ;;  %v4059_v8 = vadd.f32 %v3277_v6, %v3866_v40  ;;  %v1044_v60 = vpop.f32.mrf.mxu0  ;;  %v4061_v42 = vld [vmem:[#allocation2 + $0x20] sm:$0xff]  ;;  %v1404_v26 = vrot.slane %v4052_v12, 7 }
 0x108   : > { %v3426_v28 = vpop.eup %3425  ;;  %1342 = vst.msk [vmem:[#allocation2 + $0x118] sm:$0xff] %vm748_vm2, %v747_v16  ;;  %3451 = vrcp.f32 %v1194_v54  ;;  %v744_v31 = vmul.f32 %v3424_v20, %v3896_v63  ;;  %v4067_v33 = vadd.f32 %v3866_v40, %v1044_v60  ;;  %v1386_v13 = vrot.slane %v4061_v42, 7 }
 0x109   : > { %v3428_v34 = vpop.eup %3427  ;;  %1314 = vst.msk [vmem:[#allocation2 + $0x40] sm:$0xff] %vm748_vm2, %v1281_v21  ;;  %v1284_v1 = vmul.f32 %v3426_v28, %v3917_v18  ;;  %3453 = vpow2.f32 %v3070_v5  ;;  %v3072_v39 = vmul.f32 -1.442695, %v4059_v8  ;;  %v3280_v48 = vpop.f32.mrf.mxu0  ;;  %v1439_v63 = vsel %vm1420_vm3, %v1402_v46, %v1384_v53 }
 0x10a   : > { %v3430_v47 = vpop.eup %3429  ;;  %v746_v50 = vmul.f32 0.0, %v744_v31  ;;  %v1193_v57 = vadd.f32 1.0, %v3428_v34  ;;  %3455 = vpow2.f32 %v3069_v19  ;;  %v3071_v59 = vmul.f32 -1.442695, %v4067_v33 }
 0x10b   : > { %v3432_v4 = vpop.eup %3431  ;;  %1317 = vst.msk [vmem:[#allocation2 + $0x58] sm:$0xff] %vm748_vm2, %v1284_v1  ;;  %v1283_v18 = vmul.f32 %v3430_v47, %v3921_v24  ;;  %3457 = vpow2.f32 %v3072_v39  ;;  %v4083_v62 = vadd.f32 %v3280_v48, %v3866_v40  ;;  %v1054_v2 = vpop.f32.mrf.mxu0  ;;  %v1440_v5 = vsel %vm1420_vm3, %v1403_v52, %v1385_v14 }
 0x10c   : > { %v3434_v6 = vpop.eup %3433  ;;  %1341 = vst.msk [vmem:[#allocation2 + $0x110] sm:$0xff] %vm748_vm2, %v746_v50  ;;  %3459 = vrcp.f32 %v1193_v57  ;;  %v1196_v56 = vadd.f32 1.0, %v3432_v4  ;;  %v4093_v16 = vadd.f32 %v3866_v40, %v1054_v2  ;;  %v1441_v24 = vsel %vm1420_vm3, %v1404_v26, %v1386_v13 }
 0x10d   : > { %v3436_v54 = vpop.eup %3435  ;;  %1316 = vst.msk [vmem:[#allocation2 + $0x50] sm:$0xff] %vm748_vm2, %v1283_v18  ;;  %v1286_v19 = vmul.f32 %v3434_v6, %v3925_v29  ;;  %3461 = vpow2.f32 %v3071_v59  ;;  %v3074_v20 = vmul.f32 -1.442695, %v4083_v62  ;;  %v3283_v21 = vpop.f32.mrf.mxu0  ;;  %v1463_v60 = vsel %vm1457_vm4, %v1439_v63, 0.0 }
 0x10e   : > { %v3438_v28 = vpop.eup %3437  ;;  %3463 = vrcp.f32 %v1196_v56  ;;  %v1195_v31 = vadd.f32 1.0, %v3436_v54  ;;  %v3073_v34 = vmul.f32 -1.442695, %v4093_v16  ;;  %v4108_v1 = vadd.f32 %v3283_v21, %v3866_v40 }
 0x10f   : > { %v3440_v39 = vpop.eup %3439  ;;  %1319 = vst.msk [vmem:[#allocation2 + $0x68] sm:$0xff] %vm748_vm2, %v1286_v19  ;;  %v1285_v29 = vmul.f32 %v3438_v28, %v3931_v35  ;;  %3465 = vpow2.f32 %v3074_v20  ;;  %v1064_v48 = vpop.f32.mrf.mxu0  ;;  %v4114_v47 = vsel %vm1457_vm4, %v1440_v5, 0.0  ;;  %v4118_v63 = vsel %vm1457_vm4, %v1441_v24, 0.0 }
 0x110   : > { %v3442_v50 = vpop.eup %3441  ;;  %3467 = vrcp.f32 %v1195_v31  ;;  %v1198_v57 = vadd.f32 1.0, %v3440_v39  ;;  %v3076_v59 = vmul.f32 -1.442695, %v4108_v1  ;;  %v4122_v4 = vadd.f32 %v3866_v40, %v1064_v48 }
 0x111   : > { %v3444_v18 = vpop.eup %3443  ;;  %1318 = vst.msk [vmem:[#allocation2 + $0x60] sm:$0xff] %vm748_vm2, %v1285_v29  ;;  %v1288_v35 = vmul.f32 %v3442_v50, %v3935_v43  ;;  %3469 = vpow2.f32 %v3073_v34  ;;  %v3286_v2 = vpop.f32.mrf.mxu0  ;;  %v1503_v5 = vmul.f32 %v3954_v7, %v1463_v60  ;;  %v1539_v6 = vmul.f32 %v3957_v9, %v4114_v47 }
 0x112   : > { %v3446_v56 = vpop.eup %3445  ;;  %3471 = vrcp.f32 %v1198_v57  ;;  %v1197_v24 = vadd.f32 1.0, %v3444_v18  ;;  %v3075_v54 = vmul.f32 -1.442695, %v4122_v4  ;;  %v4132_v19 = vadd.f32 %v3286_v2, %v3866_v40 }
 0x113   : > { %v3448_v20 = vpop.eup %3447  ;;  %1321 = vst.msk [vmem:[#allocation2 + $0x78] sm:$0xff] %vm748_vm2, %v1288_v35  ;;  %v1287_v43 = vmul.f32 %v3446_v56, %v3942_v55  ;;  %3473 = vpow2.f32 %v3076_v59  ;;  %v1074_v21 = vpop.f32.mrf.mxu0  ;;  %v1571_v60 = vadd.f32 %v1539_v6, %v1503_v5  ;;  %v1607_v28 = vmul.f32 %v3991_v58, %v4118_v63 }
 0x114   : > { %v3450_v31 = vpop.eup %3449  ;;  %3475 = vrcp.f32 %v1197_v24  ;;  %v1200_v34 = vadd.f32 1.0, %v3448_v20  ;;  %v3078_v39 = vmul.f32 -1.442695, %v4132_v19  ;;  %v4140_v29 = vadd.f32 %v3866_v40, %v1074_v21 }
 0x115   : > { %v3452_v48 = vpop.eup %3451  ;;  %1320 = vst.msk [vmem:[#allocation2 + $0x70] sm:$0xff] %vm748_vm2, %v1287_v43  ;;  %v1199_v50 = vadd.f32 1.0, %v3450_v31  ;;  %3477 = vpow2.f32 %v3075_v54  ;;  %v1639_v55 = vadd.f32 %v1607_v28, %v1571_v60  ;;  %v1675_v57 = vmul.f32 %v3960_v10, %v4026_v36 }
 0x116   : > { %v3454_v59 = vpop.eup %3453  ;;  %v1290_v18 = vmul.f32 %v3452_v48, %v3951_v3  ;;  %3479 = vrcp.f32 %v1200_v34  ;;  %v3077_v35 = vmul.f32 -1.442695, %v4140_v29  ;;  %v1743_v2 = vmul.f32 %v3980_v41, %v4041_v51 }
 0x117   : > { %v3456_v40 = vpop.eup %3455  ;;  %3481 = vrcp.f32 %v1199_v50  ;;  %v1202_v5 = vadd.f32 1.0, %v3454_v59  ;;  %v1707_v6 = vadd.f32 %v1675_v57, %v1639_v55  ;;  %v1811_v56 = vmul.f32 %v4001_v11, %v4061_v42 }
 0x118   : > { %v3458_v24 = vpop.eup %3457  ;;  %1323 = vst.msk [vmem:[#allocation2 + $0x88] sm:$0xff] %vm748_vm2, %v1290_v18  ;;  %v1201_v54 = vadd.f32 1.0, %v3456_v40  ;;  %3483 = vpow2.f32 %v3078_v39  ;;  %v1875_v3 = vrot.slane %v4026_v36, 1  ;;  %v1876_v20 = vrot.slane %v4041_v51, 1 }
 0x119   : > { %v3460_v43 = vpop.eup %3459  ;;  %3485 = vrcp.f32 %v1202_v5  ;;  %v1204_v21 = vadd.f32 1.0, %v3458_v24  ;;  %v1775_v60 = vadd.f32 %v1743_v2, %v1707_v6  ;;  %v1877_v28 = vrot.slane %v4061_v42, 1 }
 0x11a   : > { %v3462_v31 = vpop.eup %3461  ;;  %v1289_v34 = vmul.f32 %v3460_v43, %v3965_v15  ;;  %3487 = vrcp.f32 %v1201_v54  ;;  %v1893_v48 = vrot.slane %v4011_v22, 1  ;;  %v1894_v50 = vrot.slane %v4028_v37, 1  ;;  %v4181_v54 = vld [vmem:[%s5571_s5 + $0x8] ss:$0 sm:$0xff] }
 0x11b   : > { %v3464_v55 = vpop.eup %3463  ;;  %3489 = vrcp.f32 %v1204_v21  ;;  %v1203_v39 = vadd.f32 1.0, %v3462_v31  ;;  %v1843_v57 = vadd.f32 %v1811_v56, %v1775_v60  ;;  %v1895_v59 = vrot.slane %v4052_v12, 1 }
 0x11c   : > { %v3466_v18 = vpop.eup %3465  ;;  %1322 = vst.msk [vmem:[#allocation2 + $0x80] sm:$0xff] %vm748_vm2, %v1289_v34  ;;  %v1292_v2 = vmul.f32 %v3464_v55, %v3972_v30  ;;  %3491 = vpow2.f32 %v3077_v35  ;;  %v1912_v15 = vsel %vm1911_vm5, %v1875_v3, %v1893_v48  ;;  %v4167_v40 = vsel %vm1911_vm5, %v1876_v20, %v1894_v50 }
 0x11d   : > { %v3468_v5 = vpop.eup %3467  ;;  %3493 = vrcp.f32 %v1203_v39  ;;  %v1206_v6 = vadd.f32 1.0, %v3466_v18  ;;  %v1421_v30 = vsel %vm1420_vm3, %v1384_v53, %v1402_v46  ;;  %v1994_v35 = vmul.f32 %v4014_v23, %v1912_v15 }
 0x11e   : > { %v3470_v56 = vpop.eup %3469  ;;  %1325 = vst.msk [vmem:[#allocation2 + $0x98] sm:$0xff] %vm748_vm2, %v1292_v2  ;;  %v1291_v24 = vmul.f32 %v3468_v5, %v3977_v45  ;;  %v4189_v36 = vsel %vm1911_vm5, %v1877_v28, %v1895_v59  ;;  %v2062_v46 = vmul.f32 %v4031_v38, %v4167_v40  ;;  %v4199_v45 = vsel %vm1420_vm3, %v1385_v14, %v1403_v52  ;;  %v4223_v2 = vld [vmem:[%s5572_s6] ss:$0 sm:$0xff] }
 0x11f   : > { %v3472_v53 = vpop.eup %3471  ;;  %3495 = vrcp.f32 %v1206_v6  ;;  %v1205_v43 = vadd.f32 1.0, %v3470_v56  ;;  %v2026_v21 = vadd.f32 %v1994_v35, %v1843_v57  ;;  %v4207_v60 = vsel %vm1420_vm3, %v1386_v13, %v1404_v26 }
 0x120   : > { %v3474_v31 = vpop.eup %3473  ;;  %1324 = vst.msk [vmem:[#allocation2 + $0x90] sm:$0xff] %vm748_vm2, %v1291_v24  ;;  %v1294_v34 = vmul.f32 %v3472_v53, %v3988_v49  ;;  %v1504_v52 = vmul.f32 %v3954_v7, %v1421_v30  ;;  %v1540_v14 = vmul.f32 %v3957_v9, %v4199_v45  ;;  %v1608_v55 = vmul.f32 %v3991_v58, %v4207_v60 }
 0x121   : > { %v3476_v39 = vpop.eup %3475  ;;  %3497 = vrcp.f32 %v1205_v43  ;;  %v1208_v57 = vadd.f32 1.0, %v3474_v31  ;;  %v2094_v18 = vadd.f32 %v2062_v46, %v2026_v21  ;;  %v2130_v26 = vmul.f32 %v4181_v54, %v4189_v36 }
 0x122   : > { %v3478_v13 = vpop.eup %3477  ;;  %1327 = vst.msk [vmem:[#allocation2 + $0xa8] sm:$0xff] %vm748_vm2, %v1294_v34  ;;  %v1293_v49 = vmul.f32 %v3476_v39, %v3998_v0  ;;  %v1572_v15 = vadd.f32 %v1540_v14, %v1504_v52  ;;  %v1930_v35 = vsel %vm1911_vm5, %v1893_v48, %v1875_v3  ;;  %v1676_v24 = vmul.f32 %v3960_v10, %v4011_v22 }
 0x123   : > { %v3480_v5 = vpop.eup %3479  ;;  %3499 = vrcp.f32 %v1208_v57  ;;  %v1207_v6 = vadd.f32 1.0, %v3478_v13  ;;  %v2162_v30 = vadd.f32 %v2130_v26, %v2094_v18  ;;  %v1931_v53 = vsel %vm1911_vm5, %v1894_v50, %v1876_v20  ;;  %v4249_v50 = vld [vmem:[#allocation2 + $0x38] sm:$0xff] }
 0x124   : > { %v3482_v56 = vpop.eup %3481  ;;  %1326 = vst.msk [vmem:[#allocation2 + $0xa0] sm:$0xff] %vm748_vm2, %v1293_v49  ;;  %v1296_v0 = vmul.f32 %v3480_v5, %v4008_v17  ;;  %v1640_v46 = vadd.f32 %v1608_v55, %v1572_v15  ;;  %v1744_v48 = vmul.f32 %v3980_v41, %v4028_v37  ;;  %v4242_v17 = vld [vmem:[#allocation2 + $0x30] sm:$0xff]  ;;  %v1812_v20 = vmul.f32 %v4001_v11, %v4052_v12 }
 0x125   : > { %v3484_v43 = vpop.eup %3483  ;;  %v1295_v21 = vmul.f32 %v3482_v56, %v4023_v27  ;;  %3501 = vrcp.f32 %v1207_v6  ;;  %v4238_v3 = vadd.f32 %v4223_v2, %v2162_v30  ;;  %v1955_v27 = vsel %vm1949_vm6, %v1930_v35, 0.0 }
 0x126   : > { %v3486_v31 = vpop.eup %3485  ;;  %1329 = vst.msk [vmem:[#allocation2 + $0xb8] sm:$0xff] %vm748_vm2, %v1296_v0  ;;  %v1210_v22 = vadd.f32 1.0, %v3484_v43  ;;  %v1708_v34 = vadd.f32 %v1676_v24, %v1640_v46  ;;  %v1932_v39 = vsel %vm1911_vm5, %v1895_v59, %v1877_v28  ;;  %v4262_v57 = vsel %vm1949_vm6, %v1931_v53, 0.0 }
 0x127   : > { %v3488_v52 = vpop.eup %3487  ;;  %1328 = vst.msk [vmem:[#allocation2 + $0xb0] sm:$0xff] %vm748_vm2, %v1295_v21  ;;  %v1298_v14 = vmul.f32 %v3486_v31, %v4036_v44  ;;  %v3081_v55 = vmul.f32 -1.442695, %v4238_v3  ;;  %v1387_v44 = vrot.slane %v4242_v17, 7  ;;  %v1995_v5 = vmul.f32 %v4014_v23, %v1955_v27 }
 0x128   : > { %v3490_v18 = vpop.eup %3489  ;;  %v1297_v26 = vmul.f32 %v3488_v52, %v4047_v61  ;;  %3503 = vrcp.f32 %v1210_v22  ;;  %v1776_v13 = vadd.f32 %v1744_v48, %v1708_v34  ;;  %v1405_v28 = vrot.slane %v4249_v50, 7 }
 0x129   : > { %v3492_v49 = vpop.eup %3491  ;;  %1331 = vst.msk [vmem:[#allocation2 + $0xc8] sm:$0xff] %vm748_vm2, %v1298_v14  ;;  %v1300_v15 = vmul.f32 %v3490_v18, %v4059_v8  ;;  %3505 = vpow2.f32 %v3081_v55  ;;  %v1505_v61 = vmul.f32 %v3954_v7, %v4114_v47  ;;  %v1541_v35 = vmul.f32 %v3957_v9, %v4118_v63 }
 0x12a   : > { %v3494_v59 = vpop.eup %3493  ;;  %1330 = vst.msk [vmem:[#allocation2 + $0xc0] sm:$0xff] %vm748_vm2, %v1297_v26  ;;  %v1209_v6 = vadd.f32 1.0, %v3492_v49  ;;  %v1844_v30 = vadd.f32 %v1812_v20, %v1776_v13  ;;  %v4279_v56 = vsel %vm1949_vm6, %v1932_v39, 0.0  ;;  %v2063_v0 = vmul.f32 %v4031_v38, %v4262_v57 }
 0x12b   : > { %1333 = vst.msk [vmem:[#allocation2 + $0xd8] sm:$0xff] %vm748_vm2, %v1300_v15  ;;  %v1299_v8 = vmul.f32 %v3494_v59, %v4067_v33  ;;  %v1442_v24 = vsel %vm1420_vm3, %v1405_v28, %v1387_v44  ;;  %v1573_v43 = vadd.f32 %v1541_v35, %v1505_v61  ;;  %v1878_v48 = vrot.slane %v4242_v17, 1  ;;  %v4330_v61 = vld [vmem:[#allocation2 + $0x40] sm:$0xff] }
 0x12c   : > { %v3496_v46 = vpop.eup %3495  ;;  %3507 = vrcp.f32 %v1209_v6  ;;  %v2027_v47 = vadd.f32 %v1995_v5, %v1844_v30  ;;  %v4287_v53 = vsel %vm1457_vm4, %v1442_v24, 0.0  ;;  %v1896_v31 = vrot.slane %v4249_v50, 1 }
 0x12d   : > { %1332 = vst.msk [vmem:[#allocation2 + $0xd0] sm:$0xff] %vm748_vm2, %v1299_v8  ;;  %v1302_v33 = vmul.f32 %v3496_v46, %v4083_v62  ;;  %v1609_v21 = vmul.f32 %v3991_v58, %v4287_v53  ;;  %v2131_v20 = vmul.f32 %v4181_v54, %v4279_v56  ;;  %v1677_v27 = vmul.f32 %v3960_v10, %v4041_v51 }
 0x12e   : > { %v3498_v22 = vpop.eup %3497  ;;  %v2095_v34 = vadd.f32 %v2063_v0, %v2027_v47  ;;  %v4301_v52 = vsel %vm1420_vm3, %v1387_v44, %v1405_v28  ;;  %v1745_v55 = vmul.f32 %v3980_v41, %v4061_v42  ;;  %v4309_v39 = vsel %vm1911_vm5, %v1878_v48, %v1896_v31 }
 0x12f   : > { %1335 = vst.msk [vmem:[#allocation2 + $0xe8] sm:$0xff] %vm748_vm2, %v1302_v33  ;;  %v1301_v62 = vmul.f32 %v3498_v22, %v4093_v16  ;;  %v1641_v14 = vadd.f32 %v1609_v21, %v1573_v43  ;;  %v1506_v51 = vmul.f32 %v3954_v7, %v4199_v45  ;;  %v1542_v13 = vmul.f32 %v3957_v9, %v4207_v60 }
 0x130   : > { %v3500_v18 = vpop.eup %3499  ;;  %v2163_v26 = vadd.f32 %v2131_v20, %v2095_v34  ;;  %v1610_v44 = vmul.f32 %v3991_v58, %v4301_v52  ;;  %v1813_v15 = vmul.f32 %v4001_v11, %v4242_v17  ;;  %v1996_v5 = vmul.f32 %v4014_v23, %v4167_v40 }
 0x131   : > { %1334 = vst.msk [vmem:[#allocation2 + $0xe0] sm:$0xff] %vm748_vm2, %v1301_v62  ;;  %v1304_v16 = vmul.f32 %v3500_v18, %v4108_v1  ;;  %v1709_v49 = vadd.f32 %v1677_v27, %v1641_v14  ;;  %v2064_v59 = vmul.f32 %v4031_v38, %v4189_v36  ;;  %v1574_v6 = vadd.f32 %v1542_v13, %v1506_v51  ;;  %v4332_v1 = vld [vmem:[#allocation2 + $0x48] sm:$0xff] }
 0x132   : > { %v3502_v28 = vpop.eup %3501  ;;  %v4324_v45 = vadd.f32 %v4223_v2, %v2163_v26  ;;  %v1933_v30 = vsel %vm1911_vm5, %v1896_v31, %v1878_v48  ;;  %v2132_v8 = vmul.f32 %v4181_v54, %v4309_v39  ;;  %v1678_v0 = vmul.f32 %v3960_v10, %v4028_v37 }
 0x133   : > { %1337 = vst.msk [vmem:[#allocation2 + $0xf8] sm:$0xff] %vm748_vm2, %v1304_v16  ;;  %v1303_v35 = vmul.f32 %v3502_v28, %v4122_v4  ;;  %v1777_v40 = vadd.f32 %v1745_v55, %v1709_v49  ;;  %v1642_v46 = vadd.f32 %v1610_v44, %v1574_v6  ;;  %v1746_v47 = vmul.f32 %v3980_v41, %v4052_v12 }
 0x134   : > { %v3082_v24 = vmul.f32 -1.442695, %v4324_v45  ;;  %v1814_v43 = vmul.f32 %v4001_v11, %v4249_v50  ;;  %v4348_v21 = vsel %vm1949_vm6, %v1933_v30, 0.0  ;;  %v1388_v48 = vrot.slane %v4330_v61, 7 }
 0x135   : > { %v3504_v33 = vpop.eup %3503  ;;  %1336 = vst.msk [vmem:[#allocation2 + $0xf0] sm:$0xff] %vm748_vm2, %v1303_v35  ;;  %v1845_v4 = vadd.f32 %v1813_v15, %v1777_v40  ;;  %v1406_v37 = vrot.slane %v4332_v1, 7  ;;  %v1710_v34 = vadd.f32 %v1678_v0, %v1642_v46  ;;  %v1543_v20 = vmul.f32 %v3957_v9, %v4287_v53 }
 0x136   : > { %v3506_v31 = vpop.eup %3505  ;;  %v1306_v22 = vmul.f32 %v3504_v33, %v4132_v19  ;;  %3509 = vpow2.f32 %v3082_v24  ;;  %v1507_v55 = vmul.f32 %v3954_v7, %v4118_v63  ;;  %v1997_v26 = vmul.f32 %v4014_v23, %v4262_v57 }
 0x137   : > { %v2329_v27 = vadd.f32 1.0, %v3506_v31  ;;  %v2028_v62 = vadd.f32 %v1996_v5, %v1845_v4  ;;  %v1443_v14 = vsel %vm1420_vm3, %v1406_v37, %v1388_v48  ;;  %v1778_v18 = vadd.f32 %v1746_v47, %v1710_v34  ;;  %v4406_v34 = vld [vmem:[#allocation2 + $0x58] sm:$0xff] }
 0x138   : > { %1339 = vst.msk [vmem:[#allocation2 + $0x108] sm:$0xff] %vm748_vm2, %v1306_v22  ;;  %v2065_v19 = vmul.f32 %v4031_v38, %v4279_v56  ;;  %v4366_v51 = vsel %vm1457_vm4, %v1443_v14, 0.0  ;;  %v1575_v16 = vadd.f32 %v1543_v20, %v1507_v55  ;;  %v1879_v5 = vrot.slane %v4330_v61, 1  ;;  %v4404_v22 = vld [vmem:[#allocation2 + $0x50] sm:$0xff] }
 0x139   : > { %v3508_v13 = vpop.eup %3507  ;;  %3511 = vrcp.f32 %v2329_v27  ;;  %v2096_v44 = vadd.f32 %v2064_v59, %v2028_v62  ;;  %v1611_v63 = vmul.f32 %v3991_v58, %v4366_v51  ;;  %v1846_v15 = vadd.f32 %v1814_v43, %v1778_v18 }
 0x13a   : > { %v1305_v49 = vmul.f32 %v3508_v13, %v4140_v29  ;;  %v1897_v57 = vrot.slane %v4332_v1, 1  ;;  %v2133_v6 = vmul.f32 %v4181_v54, %v4348_v21  ;;  %v1679_v35 = vmul.f32 %v3960_v10, %v4061_v42 }
 0x13b   : > { %v2164_v28 = vadd.f32 %v2132_v8, %v2096_v44  ;;  %v1643_v30 = vadd.f32 %v1611_v63, %v1575_v16  ;;  %v2029_v59 = vadd.f32 %v1997_v26, %v1846_v15  ;;  %v1747_v40 = vmul.f32 %v3980_v41, %v4242_v17 }
 0x13c   : > { %1338 = vst.msk [vmem:[#allocation2 + $0x100] sm:$0xff] %vm748_vm2, %v1305_v49  ;;  %v4382_v29 = vsel %vm1911_vm5, %v1879_v5, %v1897_v57  ;;  %v4386_v8 = vsel %vm1420_vm3, %v1388_v48, %v1406_v37  ;;  %v1508_v42 = vmul.f32 %v3954_v7, %v4207_v60  ;;  %v1544_v46 = vmul.f32 %v3957_v9, %v4301_v52 }
 0x13d   : > { %v4389_v0 = vadd.f32 %v4223_v2, %v2164_v28  ;;  %v1711_v24 = vadd.f32 %v1679_v35, %v1643_v30  ;;  %v2097_v47 = vadd.f32 %v2065_v19, %v2029_v59  ;;  %v1815_v43 = vmul.f32 %v4001_v11, %v4330_v61 }
 0x13e   : > { %v1998_v33 = vmul.f32 %v4014_v23, %v4189_v36  ;;  %v1612_v4 = vmul.f32 %v3991_v58, %v4386_v8  ;;  %v2066_v31 = vmul.f32 %v4031_v38, %v4309_v39  ;;  %v1576_v60 = vadd.f32 %v1544_v46, %v1508_v42 }
 0x13f   : > { %v3083_v48 = vmul.f32 -1.442695, %v4389_v0  ;;  %v1779_v37 = vadd.f32 %v1747_v40, %v1711_v24  ;;  %v2165_v20 = vadd.f32 %v2133_v6, %v2097_v47  ;;  %v2134_v27 = vmul.f32 %v4181_v54, %v4382_v29 }
 0x140   : > { %v1680_v36 = vmul.f32 %v3960_v10, %v4052_v12  ;;  %v1748_v62 = vmul.f32 %v3980_v41, %v4249_v50  ;;  %v1644_v55 = vadd.f32 %v1612_v4, %v1576_v60  ;;  %v1816_v18 = vmul.f32 %v4001_v11, %v4332_v1 }
 0x141   : > { %3513 = vpow2.f32 %v3083_v48  ;;  %v1847_v14 = vadd.f32 %v1815_v43, %v1779_v37  ;;  %v4417_v26 = vadd.f32 %v4223_v2, %v2165_v20  ;;  %v1934_v19 = vsel %vm1911_vm5, %v1897_v57, %v1879_v5 }
 0x142   : > { %v1389_v13 = vrot.slane %v4404_v22, 7  ;;  %v1407_v44 = vrot.slane %v4406_v34, 7  ;;  %v1712_v63 = vadd.f32 %v1680_v36, %v1644_v55  ;;  %v1999_v49 = vmul.f32 %v4014_v23, %v4279_v56 }
 0x143   : > { %v3510_v12 = vpop.eup %3509  ;;  %v2030_v16 = vadd.f32 %v1998_v33, %v1847_v14  ;;  %v1545_v15 = vmul.f32 %v3957_v9, %v4366_v51  ;;  %v3084_v6 = vmul.f32 -1.442695, %v4417_v26  ;;  %v1509_v5 = vmul.f32 %v3954_v7, %v4287_v53 }
 0x144   : > { %v2330_v28 = vadd.f32 1.0, %v3510_v12  ;;  %v1444_v30 = vsel %vm1420_vm3, %v1407_v44, %v1389_v13  ;;  %v1780_v35 = vadd.f32 %v1748_v62, %v1712_v63  ;;  %v2067_v59 = vmul.f32 %v4031_v38, %v4348_v21 }
 0x145   : > { %v2098_v57 = vadd.f32 %v2066_v31, %v2030_v16  ;;  %v4436_v56 = vsel %vm1457_vm4, %v1444_v30, 0.0  ;;  %v4440_v24 = vsel %vm1949_vm6, %v1934_v19, 0.0  ;;  %v1577_v42 = vadd.f32 %v1545_v15, %v1509_v5  ;;  %v4480_v15 = vld [vmem:[#allocation2 + $0x60] sm:$0xff] }
 0x146   : > { %v3512_v40 = vpop.eup %3511  ;;  %3515 = vrcp.f32 %v2330_v28  ;;  %v1613_v46 = vmul.f32 %v3991_v58, %v4436_v56  ;;  %v1848_v43 = vadd.f32 %v1816_v18, %v1780_v35  ;;  %v1681_v4 = vmul.f32 %v3960_v10, %v4242_v17  ;;  %v4482_v28 = vld [vmem:[#allocation2 + $0x68] sm:$0xff] }
 0x147   : > { %v2425_v53 = vmul.f32 %v3512_v40, %v4238_v3  ;;  %3517 = vpow2.f32 %v3084_v6  ;;  %v2166_v47 = vadd.f32 %v2134_v27, %v2098_v57  ;;  %v1880_v48 = vrot.slane %v4404_v22, 1 }
 0x148   : > { %v1645_v33 = vadd.f32 %v1613_v46, %v1577_v42  ;;  %v1898_v37 = vrot.slane %v4406_v34, 1  ;;  %v2031_v60 = vadd.f32 %v1999_v49, %v1848_v43  ;;  %v1749_v3 = vmul.f32 %v3980_v41, %v4330_v61 }
 0x149   : > { %3291 = vmatprep.mubr.msk.f32.mxu1 %vm748_vm2, %v2425_v53  ;;  %v4451_v31 = vadd.f32 %v4223_v2, %v2166_v47  ;;  %v4457_v20 = vsel %vm1420_vm3, %v1389_v13, %v1407_v44  ;;  %v1510_v36 = vmul.f32 %v3954_v7, %v4301_v52  ;;  %v1546_v62 = vmul.f32 %v3957_v9, %v4386_v8 }
 0x14a   : > { %v1713_v27 = vadd.f32 %v1681_v4, %v1645_v33  ;;  %v4461_v17 = vsel %vm1911_vm5, %v1880_v48, %v1898_v37  ;;  %v2099_v55 = vadd.f32 %v2067_v59, %v2031_v60  ;;  %v2135_v18 = vmul.f32 %v4181_v54, %v4440_v24 }
 0x14b   : > { %v3085_v14 = vmul.f32 -1.442695, %v4451_v31  ;;  %v1614_v19 = vmul.f32 %v3991_v58, %v4457_v20  ;;  %v1817_v44 = vmul.f32 %v4001_v11, %v4404_v22  ;;  %v2000_v12 = vmul.f32 %v4014_v23, %v4309_v39 }
 0x14c   : > { %v1781_v13 = vadd.f32 %v1749_v3, %v1713_v27  ;;  %v1578_v52 = vadd.f32 %v1546_v62, %v1510_v36  ;;  %v2167_v16 = vadd.f32 %v2135_v18, %v2099_v55  ;;  %v2068_v63 = vmul.f32 %v4031_v38, %v4382_v29 }
 0x14d   : > { %3519 = vpow2.f32 %v3085_v14  ;;  %v2136_v49 = vmul.f32 %v4181_v54, %v4461_v17  ;;  %v1682_v57 = vmul.f32 %v3960_v10, %v4249_v50  ;;  %v1750_v39 = vmul.f32 %v3980_v41, %v4332_v1 }
 0x14e   : > { %v3514_v6 = vpop.eup %3513  ;;  %v1849_v30 = vadd.f32 %v1817_v44, %v1781_v13  ;;  %v1646_v5 = vadd.f32 %v1614_v19, %v1578_v52  ;;  %v4489_v59 = vadd.f32 %v4223_v2, %v2167_v16  ;;  %v1818_v40 = vmul.f32 %v4001_v11, %v4406_v34 }
 0x14f   : > { %v2331_v35 = vadd.f32 1.0, %v3514_v6  ;;  %v1935_v42 = vsel %vm1911_vm5, %v1898_v37, %v1880_v48  ;;  %v1390_v47 = vrot.slane %v4480_v15, 7  ;;  %v1408_v43 = vrot.slane %v4482_v28, 7 }
 0x150   : > { %v2032_v46 = vadd.f32 %v2000_v12, %v1849_v30  ;;  %v1714_v53 = vadd.f32 %v1682_v57, %v1646_v5  ;;  %v3086_v50 = vmul.f32 -1.442695, %v4489_v59  ;;  %v1511_v33 = vmul.f32 %v3954_v7, %v4366_v51 }
 0x151   : > { %3521 = vrcp.f32 %v2331_v35  ;;  %v1547_v4 = vmul.f32 %v3957_v9, %v4436_v56  ;;  %v4504_v48 = vsel %vm1949_vm6, %v1935_v42, 0.0  ;;  %v1445_v37 = vsel %vm1420_vm3, %v1408_v43, %v1390_v47 }
 0x152   : > { %v2100_v60 = vadd.f32 %v2068_v63, %v2032_v46  ;;  %v1782_v3 = vadd.f32 %v1750_v39, %v1714_v53  ;;  %3523 = vpow2.f32 %v3086_v50  ;;  %v2001_v36 = vmul.f32 %v4014_v23, %v4348_v21 }
 0x153   : > { %v3516_v27 = vpop.eup %3515  ;;  %v4512_v51 = vsel %vm1457_vm4, %v1445_v37, 0.0  ;;  %v1579_v62 = vadd.f32 %v1547_v4, %v1511_v33  ;;  %v2069_v12 = vmul.f32 %v4031_v38, %v4440_v24  ;;  %v1683_v21 = vmul.f32 %v3960_v10, %v4330_v61  ;;  %v4554_v37 = vld [vmem:[#allocation2 + $0x70] sm:$0xff] }
 0x154   : > { %v3518_v14 = vpop.eup %3517  ;;  %v2426_v55 = vmul.f32 %v3516_v27, %v4324_v45  ;;  %v2168_v18 = vadd.f32 %v2136_v49, %v2100_v60  ;;  %v1850_v19 = vadd.f32 %v1818_v40, %v1782_v3  ;;  %v1615_v13 = vmul.f32 %v3991_v58, %v4512_v51  ;;  %v4556_v27 = vld [vmem:[#allocation2 + $0x78] sm:$0xff] }
 0x155   : > { %v2332_v44 = vadd.f32 1.0, %v3518_v14  ;;  %v1881_v52 = vrot.slane %v4480_v15, 1  ;;  %v1899_v49 = vrot.slane %v4482_v28, 1  ;;  %v2137_v6 = vmul.f32 %v4181_v54, %v4504_v48 }
 0x156   : > { %3292 = vmatmul.mubr.msk.f32.vlgmr.msra.gmra.mxu1 %vm748_vm2, %v2426_v55  ;;  %v4524_v16 = vadd.f32 %v4223_v2, %v2168_v18  ;;  %v2033_v45 = vadd.f32 %v2001_v36, %v1850_v19  ;;  %v1647_v63 = vadd.f32 %v1615_v13, %v1579_v62  ;;  %v1751_v30 = vmul.f32 %v3980_v41, %v4404_v22 }
 0x157   : > { %3525 = vrcp.f32 %v2332_v44  ;;  %v4533_v61 = vsel %vm1420_vm3, %v1390_v47, %v1408_v43  ;;  %v4538_v35 = vsel %vm1911_vm5, %v1881_v52, %v1899_v49  ;;  %v1819_v40 = vmul.f32 %v4001_v11, %v4480_v15 }
 0x158   : > { %v3087_v5 = vmul.f32 -1.442695, %v4524_v16  ;;  %v2101_v57 = vadd.f32 %v2069_v12, %v2033_v45  ;;  %v1715_v39 = vadd.f32 %v1683_v21, %v1647_v63  ;;  %v1512_v42 = vmul.f32 %v3954_v7, %v4386_v8 }
 0x159   : > { %v1548_v46 = vmul.f32 %v3957_v9, %v4457_v20  ;;  %v1616_v53 = vmul.f32 %v3991_v58, %v4533_v61  ;;  %v2002_v33 = vmul.f32 %v4014_v23, %v4382_v29  ;;  %v2070_v60 = vmul.f32 %v4031_v38, %v4461_v17 }
 0x15a   : > { %v3520_v47 = vpop.eup %3519  ;;  %3527 = vpow2.f32 %v3087_v5  ;;  %v2169_v43 = vadd.f32 %v2137_v6, %v2101_v57  ;;  %v1783_v50 = vadd.f32 %v1751_v30, %v1715_v39  ;;  %v2138_v8 = vmul.f32 %v4181_v54, %v4538_v35 }
 0x15b   : > { %v2333_v4 = vadd.f32 1.0, %v3520_v47  ;;  %v1580_v3 = vadd.f32 %v1548_v46, %v1512_v42  ;;  %v1684_v14 = vmul.f32 %v3960_v10, %v4332_v1  ;;  %v1936_v29 = vsel %vm1911_vm5, %v1899_v49, %v1881_v52 }
 0x15c   : > { %v4559_v36 = vadd.f32 %v4223_v2, %v2169_v43  ;;  %v1851_v62 = vadd.f32 %v1819_v40, %v1783_v50  ;;  %v1752_v18 = vmul.f32 %v3980_v41, %v4406_v34  ;;  %v1820_v19 = vmul.f32 %v4001_v11, %v4482_v28 }
 0x15d   : > { %3529 = vrcp.f32 %v2333_v4  ;;  %v1648_v55 = vadd.f32 %v1616_v53, %v1580_v3  ;;  %v1391_v21 = vrot.slane %v4554_v37, 7  ;;  %v1409_v45 = vrot.slane %v4556_v27, 7 }
 0x15e   : > { %v3522_v13 = vpop.eup %3521  ;;  %v3088_v44 = vmul.f32 -1.442695, %v4559_v36  ;;  %v2034_v12 = vadd.f32 %v2002_v33, %v1851_v62  ;;  %v4575_v52 = vsel %vm1949_vm6, %v1936_v29, 0.0  ;;  %v1549_v49 = vmul.f32 %v3957_v9, %v4512_v51 }
 0x15f   : > { %v2427_v1 = vmul.f32 %v3522_v13, %v4389_v0  ;;  %v1716_v63 = vadd.f32 %v1684_v14, %v1648_v55  ;;  %v3524_v6 = vpop.eup %3523  ;;  %v1446_v5 = vsel %vm1420_vm3, %v1409_v45, %v1391_v21  ;;  %v1513_v57 = vmul.f32 %v3954_v7, %v4436_v56 }
 0x160   : > { %3531 = vpow2.f32 %v3088_v44  ;;  %v2102_v30 = vadd.f32 %v2070_v60, %v2034_v12  ;;  %v2334_v0 = vadd.f32 1.0, %v3524_v6  ;;  %v2003_v40 = vmul.f32 %v4014_v23, %v4440_v24 }
 0x161   : > { %3294 = vmatprep.mubr.msk.f32.mxu1 %vm748_vm2, %v2427_v1  ;;  %v1784_v39 = vadd.f32 %v1752_v18, %v1716_v63  ;;  %v4588_v42 = vsel %vm1457_vm4, %v1446_v5, 0.0  ;;  %v2071_v53 = vmul.f32 %v4031_v38, %v4504_v48  ;;  %v1581_v47 = vadd.f32 %v1549_v49, %v1513_v57  ;;  %v4630_v57 = vld [vmem:[#allocation2 + $0x80] sm:$0xff] }
 0x162   : > { %v2170_v46 = vadd.f32 %v2138_v8, %v2102_v30  ;;  %v1617_v43 = vmul.f32 %v3991_v58, %v4588_v42  ;;  %3533 = vrcp.f32 %v2334_v0  ;;  %v2139_v50 = vmul.f32 %v4181_v54, %v4575_v52  ;;  %v4632_v0 = vld [vmem:[#allocation2 + $0x88] sm:$0xff] }
 0x163   : > { %v1852_v56 = vadd.f32 %v1820_v19, %v1784_v39  ;;  %v1882_v33 = vrot.slane %v4554_v37, 1  ;;  %v1685_v8 = vmul.f32 %v3960_v10, %v4404_v22  ;;  %v1900_v3 = vrot.slane %v4556_v27, 1 }
 0x164   : > { %v3526_v24 = vpop.eup %3525  ;;  %v4598_v4 = vadd.f32 %v4223_v2, %v2170_v46  ;;  %v1649_v60 = vadd.f32 %v1617_v43, %v1581_v47  ;;  %v1753_v29 = vmul.f32 %v3980_v41, %v4480_v15  ;;  %v4608_v55 = vsel %vm1420_vm3, %v1391_v21, %v1409_v45 }
 0x165   : > { %v2428_v62 = vmul.f32 %v3526_v24, %v4417_v26  ;;  %v2035_v14 = vadd.f32 %v2003_v40, %v1852_v56  ;;  %v1821_v13 = vmul.f32 %v4001_v11, %v4554_v37  ;;  %v4615_v22 = vsel %vm1911_vm5, %v1882_v33, %v1900_v3 }
 0x166   : > { %v3089_v18 = vmul.f32 -1.442695, %v4598_v4  ;;  %v1717_v19 = vadd.f32 %v1685_v8, %v1649_v60  ;;  %v1514_v12 = vmul.f32 %v3954_v7, %v4457_v20  ;;  %v1550_v21 = vmul.f32 %v3957_v9, %v4533_v61 }
 0x167   : > { %v3528_v44 = vpop.eup %3527  ;;  %3295 = vmatmul.mubr.msk.f32.gmra.mxu1 %vm748_vm2, %v2428_v62  ;;  %v2103_v26 = vadd.f32 %v2071_v53, %v2035_v14  ;;  %v1618_v45 = vmul.f32 %v3991_v58, %v4608_v55  ;;  %v2004_v49 = vmul.f32 %v4014_v23, %v4461_v17  ;;  %v2072_v30 = vmul.f32 %v4031_v38, %v4538_v35 }
 0x168   : > { %v2335_v1 = vadd.f32 1.0, %v3528_v44  ;;  %3535 = vpow2.f32 %v3089_v18  ;;  %v1785_v63 = vadd.f32 %v1753_v29, %v1717_v19  ;;  %v2140_v5 = vmul.f32 %v4181_v54, %v4615_v22 }
 0x169   : > { %v2171_v6 = vadd.f32 %v2139_v50, %v2103_v26  ;;  %v1582_v20 = vadd.f32 %v1550_v21, %v1514_v12  ;;  %v1686_v46 = vmul.f32 %v3960_v10, %v4406_v34  ;;  %v1937_v17 = vsel %vm1911_vm5, %v1900_v3, %v1882_v33 }
 0x16a   : > { %v3530_v39 = vpop.eup %3529  ;;  %3537 = vrcp.f32 %v2335_v1  ;;  %v1853_v40 = vadd.f32 %v1821_v13, %v1785_v63  ;;  %v1754_v56 = vmul.f32 %v3980_v41, %v4482_v28  ;;  %v1822_v24 = vmul.f32 %v4001_v11, %v4556_v27 }
 0x16b   : > { %v2429_v53 = vmul.f32 %v3530_v39, %v4451_v31  ;;  %v4640_v47 = vadd.f32 %v4223_v2, %v2171_v6  ;;  %v1650_v43 = vadd.f32 %v1618_v45, %v1582_v20  ;;  %v1392_v60 = vrot.slane %v4630_v57, 7 }
 0x16c   : > { %v2036_v50 = vadd.f32 %v2004_v49, %v1853_v40  ;;  %v1410_v34 = vrot.slane %v4632_v0, 7  ;;  %v4652_v3 = vsel %vm1949_vm6, %v1937_v17, 0.0  ;;  %v1551_v62 = vmul.f32 %v3957_v9, %v4588_v42 }
 0x16d   : > { %v3532_v8 = vpop.eup %3531  ;;  %3297 = vmatprep.mubr.msk.f32.mxu1 %vm748_vm2, %v2429_v53  ;;  %v3090_v31 = vmul.f32 -1.442695, %v4640_v47  ;;  %v1718_v33 = vadd.f32 %v1686_v46, %v1650_v43  ;;  %v1515_v19 = vmul.f32 %v3954_v7, %v4512_v51  ;;  %v2005_v44 = vmul.f32 %v4014_v23, %v4504_v48 }
 0x16e   : > { %v2336_v14 = vadd.f32 1.0, %v3532_v8  ;;  %v2104_v29 = vadd.f32 %v2072_v30, %v2036_v50  ;;  %v1447_v18 = vsel %vm1420_vm3, %v1410_v34, %v1392_v60  ;;  %v2073_v51 = vmul.f32 %v4031_v38, %v4575_v52 }
 0x16f   : > { %3539 = vpow2.f32 %v3090_v31  ;;  %v1786_v13 = vadd.f32 %v1754_v56, %v1718_v33  ;;  %v4664_v26 = vsel %vm1457_vm4, %v1447_v18, 0.0  ;;  %v3534_v12 = vpop.eup %3533  ;;  %v1583_v45 = vadd.f32 %v1551_v62, %v1515_v19  ;;  %v4704_v18 = vld [vmem:[#allocation2 + $0x90] sm:$0xff] }
 0x170   : > { %3541 = vrcp.f32 %v2336_v14  ;;  %v2172_v21 = vadd.f32 %v2140_v5, %v2104_v29  ;;  %v1619_v1 = vmul.f32 %v3991_v58, %v4664_v26  ;;  %v2430_v63 = vmul.f32 %v3534_v12, %v4489_v59  ;;  %v4707_v12 = vld [vmem:[#allocation2 + $0x98] sm:$0xff] }
 0x171   : > { %v1854_v49 = vadd.f32 %v1822_v24, %v1786_v13  ;;  %v1883_v6 = vrot.slane %v4630_v57, 1  ;;  %v2141_v30 = vmul.f32 %v4181_v54, %v4652_v3  ;;  %v1687_v5 = vmul.f32 %v3960_v10, %v4480_v15 }
 0x172   : > { %v4673_v48 = vadd.f32 %v4223_v2, %v2172_v21  ;;  %v1651_v20 = vadd.f32 %v1619_v1, %v1583_v45  ;;  %3298 = vmatmul.mubr.msk.f32.gmra.mxu1 %vm748_vm2, %v2430_v63  ;;  %v1755_v59 = vmul.f32 %v3980_v41, %v4554_v37  ;;  %v1901_v40 = vrot.slane %v4632_v0, 1 }
 0x173   : > { %v2037_v39 = vadd.f32 %v2005_v44, %v1854_v49  ;;  %v4685_v46 = vsel %vm1420_vm3, %v1392_v60, %v1410_v34  ;;  %v1516_v43 = vmul.f32 %v3954_v7, %v4533_v61  ;;  %v1552_v15 = vmul.f32 %v3957_v9, %v4608_v55 }
 0x174   : > { %v3091_v17 = vmul.f32 -1.442695, %v4673_v48  ;;  %v1719_v53 = vadd.f32 %v1687_v5, %v1651_v20  ;;  %v1823_v24 = vmul.f32 %v4001_v11, %v4630_v57  ;;  %v4696_v8 = vsel %vm1911_vm5, %v1883_v6, %v1901_v40 }
 0x175   : > { %v3536_v56 = vpop.eup %3535  ;;  %v2105_v50 = vadd.f32 %v2073_v51, %v2037_v39  ;;  %v1620_v60 = vmul.f32 %v3991_v58, %v4685_v46  ;;  %v1584_v33 = vadd.f32 %v1552_v15, %v1516_v43  ;;  %v2006_v14 = vmul.f32 %v4014_v23, %v4538_v35 }
 0x176   : > { %v2337_v34 = vadd.f32 1.0, %v3536_v56  ;;  %3543 = vpow2.f32 %v3091_v17  ;;  %v1787_v31 = vadd.f32 %v1755_v59, %v1719_v53  ;;  %v1688_v29 = vmul.f32 %v3960_v10, %v4482_v28 }
 0x177   : > { %v3538_v61 = vpop.eup %3537  ;;  %v2173_v62 = vadd.f32 %v2141_v30, %v2105_v50  ;;  %v1652_v44 = vadd.f32 %v1620_v60, %v1584_v33  ;;  %v2074_v45 = vmul.f32 %v4031_v38, %v4615_v22  ;;  %v2142_v35 = vmul.f32 %v4181_v54, %v4696_v8 }
 0x178   : > { %v2431_v19 = vmul.f32 %v3538_v61, %v4524_v16  ;;  %3545 = vrcp.f32 %v2337_v34  ;;  %v1855_v13 = vadd.f32 %v1823_v24, %v1787_v31  ;;  %v1938_v28 = vsel %vm1911_vm5, %v1901_v40, %v1883_v6 }
 0x179   : > { %v4710_v21 = vadd.f32 %v4223_v2, %v2173_v62  ;;  %v1720_v1 = vadd.f32 %v1688_v29, %v1652_v44  ;;  %v1756_v63 = vmul.f32 %v3980_v41, %v4556_v27  ;;  %v1393_v49 = vrot.slane %v4704_v18, 7 }
 0x17a   : > { %3300 = vmatprep.mubr.msk.f32.mxu1 %vm748_vm2, %v2431_v19  ;;  %v2038_v16 = vadd.f32 %v2006_v14, %v1855_v13  ;;  %v1824_v30 = vmul.f32 %v4001_v11, %v4632_v0  ;;  %v1411_v20 = vrot.slane %v4707_v12, 7  ;;  %v1553_v5 = vmul.f32 %v3957_v9, %v4664_v26 }
 0x17b   : > { %v3092_v51 = vmul.f32 -1.442695, %v4710_v21  ;;  %v1788_v59 = vadd.f32 %v1756_v63, %v1720_v1  ;;  %v4730_v40 = vsel %vm1949_vm6, %v1938_v28, 0.0  ;;  %v2007_v17 = vmul.f32 %v4014_v23, %v4575_v52 }
 0x17c   : > { %v3540_v6 = vpop.eup %3539  ;;  %v2106_v39 = vadd.f32 %v2074_v45, %v2038_v16  ;;  %v1448_v15 = vsel %vm1420_vm3, %v1411_v20, %v1393_v49  ;;  %v1517_v56 = vmul.f32 %v3954_v7, %v4588_v42  ;;  %v1884_v33 = vrot.slane %v4704_v18, 1 }
 0x17d   : > { %v3542_v53 = vpop.eup %3541  ;;  %v2338_v43 = vadd.f32 1.0, %v3540_v6  ;;  %3547 = vpow2.f32 %v3092_v51  ;;  %v1856_v60 = vadd.f32 %v1824_v30, %v1788_v59  ;;  %v4741_v34 = vsel %vm1457_vm4, %v1448_v15, 0.0 }
 0x17e   : > { %v2432_v50 = vmul.f32 %v3542_v53, %v4559_v36  ;;  %v2174_v24 = vadd.f32 %v2142_v35, %v2106_v39  ;;  %v1585_v31 = vadd.f32 %v1553_v5, %v1517_v56  ;;  %v1621_v52 = vmul.f32 %v3991_v58, %v4741_v34  ;;  %v4786_v56 = vld [vmem:[#allocation2 + $0xa8] sm:$0xff] }
 0x17f   : > { %3549 = vrcp.f32 %v2338_v43  ;;  %v2039_v42 = vadd.f32 %v2007_v17, %v1856_v60  ;;  %v2075_v36 = vmul.f32 %v4031_v38, %v4652_v3  ;;  %v2143_v62 = vmul.f32 %v4181_v54, %v4730_v40  ;;  %v4780_v17 = vld [vmem:[#allocation2 + $0xa0] sm:$0xff] }
 0x180   : > { %3301 = vmatmul.mubr.msk.f32.gmra.mxu1 %vm748_vm2, %v2432_v50  ;;  %v4748_v61 = vadd.f32 %v4223_v2, %v2174_v24  ;;  %v1653_v14 = vadd.f32 %v1621_v52, %v1585_v31  ;;  %v1689_v29 = vmul.f32 %v3960_v10, %v4554_v37  ;;  %v1902_v19 = vrot.slane %v4707_v12, 1 }
 0x181   : > { %v4759_v13 = vsel %vm1420_vm3, %v1393_v49, %v1411_v20  ;;  %v2107_v45 = vadd.f32 %v2075_v36, %v2039_v42  ;;  %v1518_v35 = vmul.f32 %v3954_v7, %v4608_v55  ;;  %v1554_v28 = vmul.f32 %v3957_v9, %v4685_v46 }
 0x182   : > { %v3093_v44 = vmul.f32 -1.442695, %v4748_v61  ;;  %v1721_v1 = vadd.f32 %v1689_v29, %v1653_v14  ;;  %v1757_v37 = vmul.f32 %v3980_v41, %v4630_v57  ;;  %v4770_v63 = vsel %vm1911_vm5, %v1884_v33, %v1902_v19 }
 0x183   : > { %v3544_v16 = vpop.eup %3543  ;;  %v1622_v49 = vmul.f32 %v3991_v58, %v4759_v13  ;;  %v2175_v30 = vadd.f32 %v2143_v62, %v2107_v45  ;;  %v1586_v20 = vadd.f32 %v1554_v28, %v1518_v35  ;;  %v1825_v6 = vmul.f32 %v4001_v11, %v4704_v18 }
 0x184   : > { %v2339_v51 = vadd.f32 1.0, %v3544_v16  ;;  %3551 = vpow2.f32 %v3093_v44  ;;  %v1789_v5 = vadd.f32 %v1757_v37, %v1721_v1  ;;  %v2008_v39 = vmul.f32 %v4014_v23, %v4615_v22 }
 0x185   : > { %v3546_v55 = vpop.eup %3545  ;;  %v1690_v59 = vmul.f32 %v3960_v10, %v4556_v27  ;;  %v4784_v43 = vadd.f32 %v4223_v2, %v2175_v30  ;;  %v1654_v15 = vadd.f32 %v1622_v49, %v1586_v20  ;;  %v2076_v24 = vmul.f32 %v4031_v38, %v4696_v8 }
 0x186   : > { %v2433_v53 = vmul.f32 %v3546_v55, %v4598_v4  ;;  %3553 = vrcp.f32 %v2339_v51  ;;  %v1857_v50 = vadd.f32 %v1825_v6, %v1789_v5  ;;  %v2144_v22 = vmul.f32 %v4181_v54, %v4770_v63  ;;  %v4826_v55 = vld [vmem:[%s5571_s5 + $0x8] ss:$0 sm:$0xff] }
 0x187   : > { %v1939_v27 = vsel %vm1911_vm5, %v1902_v19, %v1884_v33  ;;  %v3094_v4 = vmul.f32 -1.442695, %v4784_v43  ;;  %v1722_v60 = vadd.f32 %v1690_v59, %v1654_v15  ;;  %v1758_v31 = vmul.f32 %v3980_v41, %v4632_v0 }
 0x188   : > { %3303 = vmatprep.mubr.msk.f32.mxu1 %vm748_vm2, %v2433_v53  ;;  %v1394_v52 = vrot.slane %v4780_v17, 7  ;;  %v2040_v42 = vadd.f32 %v2008_v39, %v1857_v50  ;;  %v1826_v36 = vmul.f32 %v4001_v11, %v4707_v12  ;;  %v1412_v62 = vrot.slane %v4786_v56, 7 }
 0x189   : > { %v1555_v54 = vmul.f32 %v3957_v9, %v4741_v34  ;;  %3555 = vpow2.f32 %v3094_v4  ;;  %v1790_v14 = vadd.f32 %v1758_v31, %v1722_v60  ;;  %v4806_v29 = vsel %vm1949_vm6, %v1939_v27, 0.0 }
 0x18a   : > { %v3548_v33 = vpop.eup %3547  ;;  %v1519_v19 = vmul.f32 %v3954_v7, %v4664_v26  ;;  %v2108_v45 = vadd.f32 %v2076_v24, %v2040_v42  ;;  %v2009_v35 = vmul.f32 %v4014_v23, %v4652_v3  ;;  %v1449_v28 = vsel %vm1420_vm3, %v1412_v62, %v1394_v52 }
 0x18b   : > { %v2340_v44 = vadd.f32 1.0, %v3548_v33  ;;  %v1858_v1 = vadd.f32 %v1826_v36, %v1790_v14  ;;  %v2077_v37 = vmul.f32 %v4031_v38, %v4730_v40  ;;  %v4818_v49 = vsel %vm1457_vm4, %v1449_v28, 0.0 }
 0x18c   : > { %v3550_v16 = vpop.eup %3549  ;;  %v1587_v51 = vadd.f32 %v1555_v54, %v1519_v19  ;;  %v2176_v30 = vadd.f32 %v2144_v22, %v2108_v45  ;;  %v1623_v3 = vmul.f32 %v3991_v58, %v4818_v49  ;;  %v2145_v5 = vmul.f32 %v4826_v55, %v4806_v29  ;;  %v4861_v19 = vld [vmem:[#allocation2 + $0xb0] sm:$0xff]  ;;  %v4867_v45 = vld [vmem:[%s5572_s6] ss:$0 sm:$0xff] }
 0x18d   : > { %v2434_v26 = vmul.f32 %v3550_v16, %v4640_v47  ;;  %3557 = vrcp.f32 %v2340_v44  ;;  %v2041_v20 = vadd.f32 %v2009_v35, %v1858_v1  ;;  %v1691_v6 = vmul.f32 %v3960_v10, %v4630_v57  ;;  %v4872_v16 = vld [vmem:[#allocation2 + $0xb8] sm:$0xff] }
 0x18e   : > { %v1885_v39 = vrot.slane %v4780_v17, 1  ;;  %v4835_v47 = vadd.f32 %v4223_v2, %v2176_v30  ;;  %v1655_v59 = vadd.f32 %v1623_v3, %v1587_v51  ;;  %v1903_v53 = vrot.slane %v4786_v56, 1 }
 0x18f   : > { %3304 = vmatmul.mubr.msk.f32.gmra.mxu1 %vm748_vm2, %v2434_v26  ;;  %v4840_v15 = vsel %vm1420_vm3, %v1394_v52, %v1412_v62  ;;  %v2109_v50 = vadd.f32 %v2077_v37, %v2041_v20  ;;  %v1520_v24 = vmul.f32 %v3954_v7, %v4685_v46  ;;  %v1556_v57 = vmul.f32 %v3957_v9, %v4759_v13 }
 0x190   : > { %v1624_v22 = vmul.f32 %v3991_v58, %v4840_v15  ;;  %v3095_v2 = vmul.f32 -1.442695, %v4835_v47  ;;  %v1723_v4 = vadd.f32 %v1691_v6, %v1655_v59  ;;  %v1759_v60 = vmul.f32 %v3980_v41, %v4704_v18 }
 0x191   : > { %v3552_v27 = vpop.eup %3551  ;;  %v1827_v31 = vmul.f32 %v4001_v11, %v4780_v17  ;;  %v2177_v42 = vadd.f32 %v2145_v5, %v2109_v50  ;;  %v4855_v46 = vsel %vm1911_vm5, %v1885_v39, %v1903_v53  ;;  %v1588_v36 = vadd.f32 %v1556_v57, %v1520_v24 }
 0x192   : > { %v2341_v52 = vadd.f32 1.0, %v3552_v27  ;;  %3559 = vpow2.f32 %v3095_v2  ;;  %v1791_v54 = vadd.f32 %v1759_v60, %v1723_v4  ;;  %v2010_v33 = vmul.f32 %v4014_v23, %v4696_v8 }
 0x193   : > { %v3554_v62 = vpop.eup %3553  ;;  %v1692_v14 = vmul.f32 %v3960_v10, %v4632_v0  ;;  %v4870_v35 = vadd.f32 %v4867_v45, %v2177_v42  ;;  %v1656_v28 = vadd.f32 %v1624_v22, %v1588_v36  ;;  %v2078_v0 = vmul.f32 %v4031_v38, %v4770_v63 }
 0x194   : > { %v2435_v44 = vmul.f32 %v3554_v62, %v4673_v48  ;;  %3561 = vrcp.f32 %v2341_v52  ;;  %v1859_v8 = vadd.f32 %v1827_v31, %v1791_v54  ;;  %v2146_v1 = vmul.f32 %v4826_v55, %v4855_v46 }
 0x195   : > { %v1940_v48 = vsel %vm1911_vm5, %v1903_v53, %v1885_v39  ;;  %v3096_v37 = vmul.f32 -1.442695, %v4870_v35  ;;  %v1724_v51 = vadd.f32 %v1692_v14, %v1656_v28  ;;  %v1760_v26 = vmul.f32 %v3980_v41, %v4707_v12 }
 0x196   : > { %3306 = vmatprep.mubr.msk.f32.mxu1 %vm748_vm2, %v2435_v44  ;;  %v1395_v30 = vrot.slane %v4861_v19, 7  ;;  %v3556_v3 = vpop.eup %3555  ;;  %v2042_v20 = vadd.f32 %v2010_v33, %v1859_v8  ;;  %v1828_v5 = vmul.f32 %v4001_v11, %v4786_v56  ;;  %v1413_v6 = vrot.slane %v4872_v16, 7 }
 0x197   : > { %v1557_v39 = vmul.f32 %v3957_v9, %v4818_v49  ;;  %v2342_v59 = vadd.f32 1.0, %v3556_v3  ;;  %3563 = vpow2.f32 %v3096_v37  ;;  %v1792_v53 = vadd.f32 %v1760_v26, %v1724_v51 }
 0x198   : > { %v4892_v50 = vsel %vm1949_vm6, %v1940_v48, 0.0  ;;  %v2110_v24 = vadd.f32 %v2078_v0, %v2042_v20  ;;  %v2011_v57 = vmul.f32 %v4014_v23, %v4730_v40  ;;  %v1450_v22 = vsel %vm1420_vm3, %v1413_v6, %v1395_v30 }
 0x199   : > { %v1521_v27 = vmul.f32 %v3954_v7, %v4741_v34  ;;  %3565 = vrcp.f32 %v2342_v59  ;;  %v1860_v4 = vadd.f32 %v1828_v5, %v1792_v53  ;;  %v2079_v60 = vmul.f32 %v4031_v38, %v4806_v29 }
 0x19a   : > { %v3558_v2 = vpop.eup %3557  ;;  %v4904_v31 = vsel %vm1457_vm4, %v1450_v22, 0.0  ;;  %v2178_v42 = vadd.f32 %v2146_v1, %v2110_v24  ;;  %v2147_v34 = vmul.f32 %v4826_v55, %v4892_v50  ;;  %v1693_v54 = vmul.f32 %v3960_v10, %v4704_v18  ;;  %v4942_v24 = vld [vmem:[#allocation2 + $0xc0] sm:$0xff] }
 0x19b   : > { %v2436_v52 = vmul.f32 %v3558_v2, %v4710_v21  ;;  %v1589_v40 = vadd.f32 %v1557_v39, %v1521_v27  ;;  %v1625_v36 = vmul.f32 %v3991_v58, %v4904_v31  ;;  %v2043_v62 = vadd.f32 %v2011_v57, %v1860_v4 }
 0x19c   : > { %v1886_v33 = vrot.slane %v4861_v19, 1  ;;  %v4916_v14 = vadd.f32 %v4867_v45, %v2178_v42  ;;  %v1904_v44 = vrot.slane %v4872_v16, 1  ;;  %v4921_v28 = vsel %vm1420_vm3, %v1395_v30, %v1413_v6 }
 0x19d   : > { %3307 = vmatmul.mubr.msk.f32.gmra.mxu1 %vm748_vm2, %v2436_v52  ;;  %v1657_v21 = vadd.f32 %v1625_v36, %v1589_v40  ;;  %v2111_v8 = vadd.f32 %v2079_v60, %v2043_v62  ;;  %v1522_v0 = vmul.f32 %v3954_v7, %v4759_v13  ;;  %v1558_v18 = vmul.f32 %v3957_v9, %v4840_v15 }
 0x19e   : > { %v1626_v1 = vmul.f32 %v3991_v58, %v4921_v28  ;;  %v3097_v48 = vmul.f32 -1.442695, %v4916_v14  ;;  %v1761_v51 = vmul.f32 %v3980_v41, %v4780_v17  ;;  %v1829_v26 = vmul.f32 %v4001_v11, %v4861_v19 }
 0x19f   : > { %v1725_v37 = vadd.f32 %v1693_v54, %v1657_v21  ;;  %v3560_v30 = vpop.eup %3559  ;;  %v2179_v3 = vadd.f32 %v2147_v34, %v2111_v8  ;;  %v4936_v13 = vsel %vm1911_vm5, %v1886_v33, %v1904_v44  ;;  %v2012_v20 = vmul.f32 %v4014_v23, %v4770_v63  ;;  %v4950_v63 = vld [vmem:[#allocation2 + $0xc8] sm:$0xff] }
 0x1a0   : > { %v1590_v5 = vadd.f32 %v1558_v18, %v1522_v0  ;;  %v2343_v39 = vadd.f32 1.0, %v3560_v30  ;;  %3567 = vpow2.f32 %v3097_v48  ;;  %v2080_v53 = vmul.f32 %v4031_v38, %v4855_v46 }
 0x1a1   : > { %v3562_v6 = vpop.eup %3561  ;;  %v1793_v59 = vadd.f32 %v1761_v51, %v1725_v37  ;;  %v4946_v22 = vadd.f32 %v4867_v45, %v2179_v3  ;;  %v1694_v2 = vmul.f32 %v3960_v10, %v4707_v12  ;;  %v2148_v60 = vmul.f32 %v4826_v55, %v4936_v13 }
 0x1a2   : > { %v2437_v57 = vmul.f32 %v3562_v6, %v4748_v61  ;;  %v1658_v27 = vadd.f32 %v1626_v1, %v1590_v5  ;;  %3569 = vrcp.f32 %v2343_v39  ;;  %v1941_v52 = vsel %vm1911_vm5, %v1904_v44, %v1886_v33 }
 0x1a3   : > { %v1861_v4 = vadd.f32 %v1829_v26, %v1793_v59  ;;  %v3098_v61 = vmul.f32 -1.442695, %v4946_v22  ;;  %v1762_v40 = vmul.f32 %v3980_v41, %v4786_v56  ;;  %v1396_v12 = vrot.slane %v4942_v24, 7 }
 0x1a4   : > { %3309 = vmatprep.mubr.msk.f32.mxu1 %vm748_vm2, %v2437_v57  ;;  %v1726_v42 = vadd.f32 %v1694_v2, %v1658_v27  ;;  %v3564_v36 = vpop.eup %3563  ;;  %v1830_v34 = vmul.f32 %v4001_v11, %v4872_v16  ;;  %v1414_v54 = vrot.slane %v4950_v63, 7  ;;  %v1559_v33 = vmul.f32 %v3957_v9, %v4904_v31 }
 0x1a5   : > { %v2044_v62 = vadd.f32 %v2012_v20, %v1861_v4  ;;  %v2344_v21 = vadd.f32 1.0, %v3564_v36  ;;  %3571 = vpow2.f32 %v3098_v61  ;;  %v4968_v8 = vsel %vm1949_vm6, %v1941_v52, 0.0 }
 0x1a6   : > { %v1794_v44 = vadd.f32 %v1762_v40, %v1726_v42  ;;  %v3566_v0 = vpop.eup %3565  ;;  %v2013_v1 = vmul.f32 %v4014_v23, %v4806_v29  ;;  %v1451_v48 = vsel %vm1420_vm3, %v1414_v54, %v1396_v12  ;;  %v1523_v37 = vmul.f32 %v3954_v7, %v4818_v49 }
 0x1a7   : > { %v2112_v18 = vadd.f32 %v2080_v53, %v2044_v62  ;;  %v2438_v51 = vmul.f32 %v3566_v0, %v4784_v43  ;;  %3573 = vrcp.f32 %v2344_v21  ;;  %v4979_v30 = vsel %vm1457_vm4, %v1451_v48, 0.0 }
 0x1a8   : > { %v1862_v26 = vadd.f32 %v1830_v34, %v1794_v44  ;;  %v1591_v20 = vadd.f32 %v1559_v33, %v1523_v37  ;;  %v1627_v5 = vmul.f32 %v3991_v58, %v4979_v30  ;;  %v1887_v29 = vrot.slane %v4942_v24, 1  ;;  %v5018_v44 = vld [vmem:[#allocation2 + $0xd0] sm:$0xff]  ;;  %v5027_v37 = vld [vmem:[#allocation2 + $0xd8] sm:$0xff] }
 0x1a9   : > { %v2180_v3 = vadd.f32 %v2148_v60, %v2112_v18  ;;  %3310 = vmatmul.mubr.msk.f32.gmra.mxu1 %vm748_vm2, %v2438_v51  ;;  %v2081_v49 = vmul.f32 %v4031_v38, %v4892_v50  ;;  %v2149_v43 = vmul.f32 %v4826_v55, %v4968_v8  ;;  %v1695_v39 = vmul.f32 %v3960_v10, %v4780_v17 }
 0x1aa   : > { %v2045_v6 = vadd.f32 %v2013_v1, %v1862_v26  ;;  %v1659_v53 = vadd.f32 %v1627_v5, %v1591_v20  ;;  %v1905_v57 = vrot.slane %v4950_v63, 1  ;;  %v4997_v27 = vsel %vm1420_vm3, %v1396_v12, %v1414_v54 }
 0x1ab   : > { %v4992_v59 = vadd.f32 %v4867_v45, %v2180_v3  ;;  %v1524_v4 = vmul.f32 %v3954_v7, %v4840_v15  ;;  %v1560_v60 = vmul.f32 %v3957_v9, %v4921_v28  ;;  %v1628_v17 = vmul.f32 %v3991_v58, %v4997_v27 }
 0x1ac   : > { %v2113_v2 = vadd.f32 %v2081_v49, %v2045_v6  ;;  %v1727_v61 = vadd.f32 %v1695_v39, %v1659_v53  ;;  %v1763_v42 = vmul.f32 %v3980_v41, %v4861_v19  ;;  %v5010_v40 = vsel %vm1911_vm5, %v1887_v29, %v1905_v57 }
 0x1ad   : > { %v3099_v52 = vmul.f32 -1.442695, %v4992_v59  ;;  %v3568_v12 = vpop.eup %3567  ;;  %v1831_v15 = vmul.f32 %v4001_v11, %v4942_v24  ;;  %v2014_v62 = vmul.f32 %v4014_v23, %v4855_v46  ;;  %v1592_v34 = vadd.f32 %v1560_v60, %v1524_v4 }
 0x1ae   : > { %v2181_v36 = vadd.f32 %v2149_v43, %v2113_v2  ;;  %v2345_v54 = vadd.f32 1.0, %v3568_v12  ;;  %v1795_v33 = vadd.f32 %v1763_v42, %v1727_v61  ;;  %v2082_v21 = vmul.f32 %v4031_v38, %v4936_v13 }
 0x1af   : > { %3575 = vpow2.f32 %v3099_v52  ;;  %v3570_v0 = vpop.eup %3569  ;;  %v2150_v1 = vmul.f32 %v4826_v55, %v5010_v40  ;;  %v1660_v48 = vadd.f32 %v1628_v17, %v1592_v34  ;;  %v1696_v46 = vmul.f32 %v3960_v10, %v4786_v56 }
 0x1b0   : > { %v5021_v18 = vadd.f32 %v4867_v45, %v2181_v36  ;;  %v2439_v51 = vmul.f32 %v3570_v0, %v4835_v47  ;;  %3577 = vrcp.f32 %v2345_v54  ;;  %v1863_v26 = vadd.f32 %v1831_v15, %v1795_v33 }
 0x1b1   : > { %v1942_v3 = vsel %vm1911_vm5, %v1905_v57, %v1887_v29  ;;  %v1728_v5 = vadd.f32 %v1696_v46, %v1660_v48  ;;  %v1764_v6 = vmul.f32 %v3980_v41, %v4872_v16  ;;  %v1397_v49 = vrot.slane %v5018_v44, 7 }
 0x1b2   : > { %v3100_v20 = vmul.f32 -1.442695, %v5021_v18  ;;  %v3572_v43 = vpop.eup %3571  ;;  %3312 = vmatprep.mubr.msk.f32.mxu1 %vm748_vm2, %v2439_v51  ;;  %v2046_v56 = vadd.f32 %v2014_v62, %v1863_v26  ;;  %v1832_v47 = vmul.f32 %v4001_v11, %v4950_v63  ;;  %v1415_v39 = vrot.slane %v5027_v37, 7 }
 0x1b3   : > { %v1561_v29 = vmul.f32 %v3957_v9, %v4979_v30  ;;  %v2346_v53 = vadd.f32 1.0, %v3572_v43  ;;  %v1796_v57 = vadd.f32 %v1764_v6, %v1728_v5  ;;  %v5044_v2 = vsel %vm1949_vm6, %v1942_v3, 0.0 }
 0x1b4   : > { %3579 = vpow2.f32 %v3100_v20  ;;  %v3574_v4 = vpop.eup %3573  ;;  %v2114_v60 = vadd.f32 %v2082_v21, %v2046_v56  ;;  %v2015_v17 = vmul.f32 %v4014_v23, %v4892_v50  ;;  %v1452_v52 = vsel %vm1420_vm3, %v1415_v39, %v1397_v49 }
 0x1b5   : > { %v1525_v61 = vmul.f32 %v3954_v7, %v4904_v31  ;;  %v2440_v42 = vmul.f32 %v3574_v4, %v4870_v35  ;;  %3581 = vrcp.f32 %v2346_v53  ;;  %v1864_v12 = vadd.f32 %v1832_v47, %v1796_v57  ;;  %v5094_v57 = vld [vmem:[#allocation2 + $0xe0] sm:$0xff] }
 0x1b6   : > { %v5055_v36 = vsel %vm1457_vm4, %v1452_v52, 0.0  ;;  %v2182_v15 = vadd.f32 %v2150_v1, %v2114_v60  ;;  %v1888_v50 = vrot.slane %v5018_v44, 1  ;;  %v2083_v31 = vmul.f32 %v4031_v38, %v4968_v8 }
 0x1b7   : > { %v1593_v62 = vadd.f32 %v1561_v29, %v1525_v61  ;;  %v1629_v34 = vmul.f32 %v3991_v58, %v5055_v36  ;;  %3313 = vmatmul.mubr.msk.f32.gmra.mxu1 %vm748_vm2, %v2440_v42  ;;  %v2047_v54 = vadd.f32 %v2015_v17, %v1864_v12  ;;  %v2151_v35 = vmul.f32 %v4826_v55, %v5044_v2  ;;  %v5103_v61 = vld [vmem:[#allocation2 + $0xe8] sm:$0xff] }
 0x1b8   : > { %v1697_v33 = vmul.f32 %v3960_v10, %v4861_v19  ;;  %v5068_v21 = vadd.f32 %v4867_v45, %v2182_v15  ;;  %v1906_v1 = vrot.slane %v5027_v37, 1  ;;  %v5073_v48 = vsel %vm1420_vm3, %v1397_v49, %v1415_v39 }
 0x1b9   : > { %v1661_v0 = vadd.f32 %v1629_v34, %v1593_v62  ;;  %v2115_v46 = vadd.f32 %v2083_v31, %v2047_v54  ;;  %v1526_v51 = vmul.f32 %v3954_v7, %v4921_v28  ;;  %v1562_v26 = vmul.f32 %v3957_v9, %v4997_v27 }
 0x1ba   : > { %v1630_v19 = vmul.f32 %v3991_v58, %v5073_v48  ;;  %v3101_v3 = vmul.f32 -1.442695, %v5068_v21  ;;  %v1765_v5 = vmul.f32 %v3980_v41, %v4942_v24  ;;  %v5086_v6 = vsel %vm1911_vm5, %v1888_v50, %v1906_v1 }
 0x1bb   : > { %v1729_v20 = vadd.f32 %v1697_v33, %v1661_v0  ;;  %v2183_v43 = vadd.f32 %v2151_v35, %v2115_v46  ;;  %v1833_v28 = vmul.f32 %v4001_v11, %v5018_v44  ;;  %v2016_v56 = vmul.f32 %v4014_v23, %v4936_v13 }
 0x1bc   : > { %v3576_v49 = vpop.eup %3575  ;;  %v1594_v47 = vadd.f32 %v1562_v26, %v1526_v51  ;;  %3583 = vpow2.f32 %v3101_v3  ;;  %v2084_v53 = vmul.f32 %v4031_v38, %v5010_v40  ;;  %v2152_v17 = vmul.f32 %v4826_v55, %v5086_v6 }
 0x1bd   : > { %v2347_v39 = vadd.f32 1.0, %v3576_v49  ;;  %v1797_v29 = vadd.f32 %v1765_v5, %v1729_v20  ;;  %v3578_v4 = vpop.eup %3577  ;;  %v5097_v60 = vadd.f32 %v4867_v45, %v2183_v43  ;;  %v1698_v13 = vmul.f32 %v3960_v10, %v4872_v16 }
 0x1be   : > { %v1662_v52 = vadd.f32 %v1630_v19, %v1594_v47  ;;  %v2441_v42 = vmul.f32 %v3578_v4, %v4916_v14  ;;  %v1943_v15 = vsel %vm1911_vm5, %v1906_v1, %v1888_v50  ;;  %v1766_v54 = vmul.f32 %v3980_v41, %v4950_v63 }
 0x1bf   : > { %3585 = vrcp.f32 %v2347_v39  ;;  %v1865_v12 = vadd.f32 %v1833_v28, %v1797_v29  ;;  %v3102_v62 = vmul.f32 -1.442695, %v5097_v60  ;;  %v1398_v31 = vrot.slane %v5094_v57, 7 }
 0x1c0   : > { %v1730_v34 = vadd.f32 %v1698_v13, %v1662_v52  ;;  %3315 = vmatprep.mubr.msk.f32.mxu1 %vm748_vm2, %v2441_v42  ;;  %v1834_v14 = vmul.f32 %v4001_v11, %v5027_v37  ;;  %v1416_v33 = vrot.slane %v5103_v61, 7  ;;  %v1563_v50 = vmul.f32 %v3957_v9, %v5055_v36 }
 0x1c1   : > { %v3580_v35 = vpop.eup %3579  ;;  %v2048_v16 = vadd.f32 %v2016_v56, %v1865_v12  ;;  %3587 = vpow2.f32 %v3102_v62  ;;  %v5120_v46 = vsel %vm1949_vm6, %v1943_v15, 0.0  ;;  %v2017_v19 = vmul.f32 %v4014_v23, %v4968_v8 }
 0x1c2   : > { %v2348_v0 = vadd.f32 1.0, %v3580_v35  ;;  %v1798_v1 = vadd.f32 %v1766_v54, %v1730_v34  ;;  %v3582_v51 = vpop.eup %3581  ;;  %v1453_v3 = vsel %vm1420_vm3, %v1416_v33, %v1398_v31  ;;  %v1527_v20 = vmul.f32 %v3954_v7, %v4979_v30 }
 0x1c3   : > { %v2116_v26 = vadd.f32 %v2084_v53, %v2048_v16  ;;  %v2442_v5 = vmul.f32 %v3582_v51, %v4946_v22  ;;  %v5131_v43 = vsel %vm1457_vm4, %v1453_v3, 0.0  ;;  %v1889_v8 = vrot.slane %v5094_v57, 1 }
 0x1c4   : > { %3589 = vrcp.f32 %v2348_v0  ;;  %v1866_v49 = vadd.f32 %v1834_v14, %v1798_v1  ;;  %v1595_v56 = vadd.f32 %v1563_v50, %v1527_v20  ;;  %v1631_v47 = vmul.f32 %v3991_v58, %v5131_v43  ;;  %v5170_v1 = vld [vmem:[#allocation2 + $0xf0] sm:$0xff]  ;;  %v5179_v20 = vld [vmem:[#allocation2 + $0xf8] sm:$0xff] }
 0x1c5   : > { %v2184_v28 = vadd.f32 %v2152_v17, %v2116_v26  ;;  %3316 = vmatmul.mubr.msk.f32.gmra.mxu1 %vm748_vm2, %v2442_v5  ;;  %v2085_v30 = vmul.f32 %v4031_v38, %v5044_v2  ;;  %v2153_v22 = vmul.f32 %v4826_v55, %v5120_v46  ;;  %v1699_v29 = vmul.f32 %v3960_v10, %v4942_v24 }
 0x1c6   : > { %v2049_v39 = vadd.f32 %v2017_v19, %v1866_v49  ;;  %v1663_v4 = vadd.f32 %v1631_v47, %v1595_v56  ;;  %v1907_v17 = vrot.slane %v5103_v61, 1  ;;  %v5149_v52 = vsel %vm1420_vm3, %v1398_v31, %v1416_v33 }
 0x1c7   : > { %v5144_v53 = vadd.f32 %v4867_v45, %v2184_v28  ;;  %v1528_v42 = vmul.f32 %v3954_v7, %v4997_v27  ;;  %v1564_v12 = vmul.f32 %v3957_v9, %v5073_v48  ;;  %v1632_v24 = vmul.f32 %v3991_v58, %v5149_v52 }
 0x1c8   : > { %v2117_v13 = vadd.f32 %v2085_v30, %v2049_v39  ;;  %v1731_v62 = vadd.f32 %v1699_v29, %v1663_v4  ;;  %v1767_v34 = vmul.f32 %v3980_v41, %v5018_v44  ;;  %v5162_v54 = vsel %vm1911_vm5, %v1889_v8, %v1907_v17 }
 0x1c9   : > { %v3103_v15 = vmul.f32 -1.442695, %v5144_v53  ;;  %v3584_v31 = vpop.eup %3583  ;;  %v1835_v27 = vmul.f32 %v4001_v11, %v5094_v57  ;;  %v2018_v16 = vmul.f32 %v4014_v23, %v5010_v40  ;;  %v1596_v14 = vadd.f32 %v1564_v12, %v1528_v42 }
 0x1ca   : > { %v2185_v35 = vadd.f32 %v2153_v22, %v2117_v13  ;;  %v2349_v33 = vadd.f32 1.0, %v3584_v31  ;;  %v1799_v50 = vadd.f32 %v1767_v34, %v1731_v62  ;;  %v2086_v0 = vmul.f32 %v4031_v38, %v5086_v6 }
 0x1cb   : > { %3591 = vpow2.f32 %v3103_v15  ;;  %v2154_v19 = vmul.f32 %v4826_v55, %v5162_v54  ;;  %v1664_v3 = vadd.f32 %v1632_v24, %v1596_v14  ;;  %v1700_v40 = vmul.f32 %v3960_v10, %v4950_v63 }
 0x1cc   : > { %v3586_v51 = vpop.eup %3585  ;;  %v5173_v26 = vadd.f32 %v4867_v45, %v2185_v35  ;;  %3593 = vrcp.f32 %v2349_v33  ;;  %v1867_v49 = vadd.f32 %v1835_v27, %v1799_v50  ;;  %v1944_v28 = vsel %vm1911_vm5, %v1907_v17, %v1889_v8 }
 0x1cd   : > { %v2443_v5 = vmul.f32 %v3586_v51, %v4992_v59  ;;  %v1732_v47 = vadd.f32 %v1700_v40, %v1664_v3  ;;  %v1768_v39 = vmul.f32 %v3980_v41, %v5027_v37  ;;  %v1399_v30 = vrot.slane %v5170_v1, 7 }
 0x1ce   : > { %v3104_v56 = vmul.f32 -1.442695, %v5173_v26  ;;  %v3588_v22 = vpop.eup %3587  ;;  %v2050_v63 = vadd.f32 %v2018_v16, %v1867_v49  ;;  %v1836_v59 = vmul.f32 %v4001_v11, %v5103_v61  ;;  %v1417_v29 = vrot.slane %v5179_v20, 7 }
 0x1cf   : > { %3318 = vmatprep.mubr.msk.f32.mxu1 %vm748_vm2, %v2443_v5  ;;  %v1565_v8 = vmul.f32 %v3957_v9, %v5131_v43  ;;  %v2350_v4 = vadd.f32 1.0, %v3588_v22  ;;  %v1800_v17 = vadd.f32 %v1768_v39, %v1732_v47  ;;  %v5196_v13 = vsel %vm1949_vm6, %v1944_v28, 0.0 }
 0x1d0   : > { %3595 = vpow2.f32 %v3104_v56  ;;  %v2118_v12 = vadd.f32 %v2086_v0, %v2050_v63  ;;  %v2019_v24 = vmul.f32 %v4014_v23, %v5044_v2  ;;  %v1454_v15 = vsel %vm1420_vm3, %v1417_v29, %v1399_v30 }
 0x1d1   : > { %v3590_v42 = vpop.eup %3589  ;;  %v1529_v62 = vmul.f32 %v3954_v7, %v5055_v36  ;;  %3597 = vrcp.f32 %v2350_v4  ;;  %v1868_v31 = vadd.f32 %v1836_v59, %v1800_v17  ;;  %v5207_v35 = vsel %vm1457_vm4, %v1454_v15, 0.0  ;;  %v5246_v17 = vld [vmem:[#allocation2 + $0x100] sm:$0xff] }
 0x1d2   : > { %v2444_v34 = vmul.f32 %v3590_v42, %v5021_v18  ;;  %v2186_v27 = vadd.f32 %v2154_v19, %v2118_v12  ;;  %v1633_v14 = vmul.f32 %v3991_v58, %v5207_v35  ;;  %v1890_v2 = vrot.slane %v5170_v1, 1 }
 0x1d3   : > { %v1597_v16 = vadd.f32 %v1565_v8, %v1529_v62  ;;  %v2051_v33 = vadd.f32 %v2019_v24, %v1868_v31  ;;  %v2087_v36 = vmul.f32 %v4031_v38, %v5120_v46  ;;  %v2155_v18 = vmul.f32 %v4826_v55, %v5196_v13  ;;  %v5255_v62 = vld [vmem:[#allocation2 + $0x108] sm:$0xff] }
 0x1d4   : > { %3319 = vmatmul.mubr.msk.f32.gmra.mxu1 %vm748_vm2, %v2444_v34  ;;  %v1701_v50 = vmul.f32 %v3960_v10, %v5018_v44  ;;  %v5220_v0 = vadd.f32 %v4867_v45, %v2186_v27  ;;  %v1908_v19 = vrot.slane %v5179_v20, 1  ;;  %v5225_v3 = vsel %vm1420_vm3, %v1399_v30, %v1417_v29 }
 0x1d5   : > { %v1665_v51 = vadd.f32 %v1633_v14, %v1597_v16  ;;  %v2119_v40 = vadd.f32 %v2087_v36, %v2051_v33  ;;  %v1530_v5 = vmul.f32 %v3954_v7, %v5073_v48  ;;  %v1566_v49 = vmul.f32 %v3957_v9, %v5149_v52 }
 0x1d6   : > { %v1634_v44 = vmul.f32 %v3991_v58, %v5225_v3  ;;  %v3105_v28 = vmul.f32 -1.442695, %v5220_v0  ;;  %v1769_v47 = vmul.f32 %v3980_v41, %v5094_v57  ;;  %v5238_v39 = vsel %vm1911_vm5, %v1890_v2, %v1908_v19 }
 0x1d7   : > { %v1733_v56 = vadd.f32 %v1701_v50, %v1665_v51  ;;  %v2187_v22 = vadd.f32 %v2155_v18, %v2119_v40  ;;  %v1837_v48 = vmul.f32 %v4001_v11, %v5170_v1  ;;  %v2020_v63 = vmul.f32 %v4014_v23, %v5086_v6 }
 0x1d8   : > { %v3592_v30 = vpop.eup %3591  ;;  %v1598_v59 = vadd.f32 %v1566_v49, %v1530_v5  ;;  %3599 = vpow2.f32 %v3105_v28  ;;  %v2088_v4 = vmul.f32 %v4031_v38, %v5162_v54  ;;  %v2156_v24 = vmul.f32 %v4826_v55, %v5238_v39 }
 0x1d9   : > { %v2351_v29 = vadd.f32 1.0, %v3592_v30  ;;  %v1801_v8 = vadd.f32 %v1769_v47, %v1733_v56  ;;  %v3594_v42 = vpop.eup %3593  ;;  %v5249_v12 = vadd.f32 %v4867_v45, %v2187_v22  ;;  %v1702_v6 = vmul.f32 %v3960_v10, %v5027_v37 }
 0x1da   : > { %v1666_v15 = vadd.f32 %v1634_v44, %v1598_v59  ;;  %v2445_v34 = vmul.f32 %v3594_v42, %v5068_v21  ;;  %v1945_v27 = vsel %vm1911_vm5, %v1908_v19, %v1890_v2  ;;  %v1770_v33 = vmul.f32 %v3980_v41, %v5103_v61 }
 0x1db   : > { %3601 = vrcp.f32 %v2351_v29  ;;  %v1869_v31 = vadd.f32 %v1837_v48, %v1801_v8  ;;  %v3106_v16 = vmul.f32 -1.442695, %v5249_v12  ;;  %v1400_v36 = vrot.slane %v5246_v17, 7 }
 0x1dc   : > { %v1734_v14 = vadd.f32 %v1702_v6, %v1666_v15  ;;  %3321 = vmatprep.mubr.msk.f32.mxu1 %vm748_vm2, %v2445_v34  ;;  %v1838_v21 = vmul.f32 %v4001_v11, %v5179_v20  ;;  %v1418_v50 = vrot.slane %v5255_v62, 7  ;;  %v1567_v2 = vmul.f32 %v3957_v9, %v5207_v35 }
 0x1dd   : > { %v3596_v18 = vpop.eup %3595  ;;  %v2052_v37 = vadd.f32 %v2020_v63, %v1869_v31  ;;  %3603 = vpow2.f32 %v3106_v16  ;;  %v5272_v40 = vsel %vm1949_vm6, %v1945_v27, 0.0  ;;  %v2021_v44 = vmul.f32 %v4014_v23, %v5120_v46 }
 0x1de   : > { %v2352_v51 = vadd.f32 1.0, %v3596_v18  ;;  %v1802_v19 = vadd.f32 %v1770_v33, %v1734_v14  ;;  %v3598_v5 = vpop.eup %3597  ;;  %v1455_v28 = vsel %vm1420_vm3, %v1418_v50, %v1400_v36  ;;  %v1531_v56 = vmul.f32 %v3954_v7, %v5131_v43 }
 0x1df   : > { %v2120_v49 = vadd.f32 %v2088_v4, %v2052_v37  ;;  %v2446_v47 = vmul.f32 %v3598_v5, %v5097_v60  ;;  %v1495_v22 = vsel %vm1457_vm4, %v1455_v28, 0.0  ;;  %v1891_v29 = vrot.slane %v5246_v17, 1 }
 0x1e0   : > { %3605 = vrcp.f32 %v2352_v51  ;;  %v1870_v30 = vadd.f32 %v1838_v21, %v1802_v19  ;;  %v1599_v63 = vadd.f32 %v1567_v2, %v1531_v56  ;;  %v1635_v59 = vmul.f32 %v3991_v58, %v1495_v22  ;;  %v5319_v19 = vld [vmem:[#allocation2 + $0x110] sm:$0xff]  ;;  %v5328_v56 = vld [vmem:[#allocation2 + $0x118] sm:$0xff] }
 0x1e1   : > { %v2188_v48 = vadd.f32 %v2156_v24, %v2120_v49  ;;  %3322 = vmatmul.mubr.msk.f32.gmra.mxu1 %vm748_vm2, %v2446_v47  ;;  %v2089_v8 = vmul.f32 %v4031_v38, %v5196_v13  ;;  %v2157_v60 = vmul.f32 %v4826_v55, %v5272_v40  ;;  %v1703_v43 = vmul.f32 %v3960_v10, %v5094_v57 }
 0x1e2   : > { %v2053_v46 = vadd.f32 %v2021_v44, %v1870_v30  ;;  %v1667_v42 = vadd.f32 %v1635_v59, %v1599_v63  ;;  %v1909_v24 = vrot.slane %v5255_v62, 1  ;;  %v5298_v15 = vsel %vm1420_vm3, %v1400_v36, %v1418_v50 }
 0x1e3   : > { %v5293_v4 = vadd.f32 %v4867_v45, %v2188_v48  ;;  %v1532_v34 = vmul.f32 %v3954_v7, %v5149_v52  ;;  %v1568_v31 = vmul.f32 %v3957_v9, %v5225_v3  ;;  %v1636_v57 = vmul.f32 %v3991_v58, %v5298_v15 }
 0x1e4   : > { %v2121_v6 = vadd.f32 %v2089_v8, %v2053_v46  ;;  %v1735_v16 = vadd.f32 %v1703_v43, %v1667_v42  ;;  %v1771_v14 = vmul.f32 %v3980_v41, %v5170_v1  ;;  %v5311_v33 = vsel %vm1911_vm5, %v1891_v29, %v1909_v24 }
 0x1e5   : > { %v3107_v27 = vmul.f32 -1.442695, %v5293_v4  ;;  %v3600_v36 = vpop.eup %3599  ;;  %v1839_v52 = vmul.f32 %v4001_v11, %v5246_v17  ;;  %v2022_v37 = vmul.f32 %v4014_v23, %v5162_v54  ;;  %v1600_v21 = vadd.f32 %v1568_v31, %v1532_v34 }
 0x1e6   : > { %v2189_v18 = vadd.f32 %v2157_v60, %v2121_v6  ;;  %v2353_v50 = vadd.f32 1.0, %v3600_v36  ;;  %v1803_v2 = vadd.f32 %v1771_v14, %v1735_v16  ;;  %v2090_v51 = vmul.f32 %v4031_v38, %v5238_v39 }
 0x1e7   : > { %3607 = vpow2.f32 %v3107_v27  ;;  %v2158_v44 = vmul.f32 %v4826_v55, %v5311_v33  ;;  %v1668_v28 = vadd.f32 %v1636_v57, %v1600_v21  ;;  %v1704_v54 = vmul.f32 %v3960_v10, %v5103_v61 }
 0x1e8   : > { %v3602_v5 = vpop.eup %3601  ;;  %v5322_v49 = vadd.f32 %v4867_v45, %v2189_v18  ;;  %3609 = vrcp.f32 %v2353_v50  ;;  %v1871_v30 = vadd.f32 %v1839_v52, %v1803_v2  ;;  %v1772_v48 = vmul.f32 %v3980_v41, %v5179_v20 }
 0x1e9   : > { %v2447_v47 = vmul.f32 %v3602_v5, %v5144_v53  ;;  %v1736_v59 = vadd.f32 %v1704_v54, %v1668_v28  ;;  %v1840_v46 = vmul.f32 %v4001_v11, %v5255_v62  ;;  %v1401_v8 = vrot.slane %v5319_v19, 7 }
 0x1ea   : > { %v3108_v63 = vmul.f32 -1.442695, %v5322_v49  ;;  %v3604_v60 = vpop.eup %3603  ;;  %v2054_v61 = vadd.f32 %v2022_v37, %v1871_v30  ;;  %v1419_v43 = vrot.slane %v5328_v56, 7  ;;  %v1533_v53 = vmul.f32 %v3954_v7, %v5207_v35 }
 0x1eb   : > { %3324 = vmatprep.mubr.msk.f32.mxu1 %vm748_vm2, %v2447_v47  ;;  %v1569_v42 = vmul.f32 %v3957_v9, %v1495_v22  ;;  %v2354_v6 = vadd.f32 1.0, %v3604_v60  ;;  %v1804_v34 = vadd.f32 %v1772_v48, %v1736_v59  ;;  %v1946_v31 = vsel %vm1911_vm5, %v1909_v24, %v1891_v29 }
 0x1ec   : > { %3611 = vpow2.f32 %v3108_v63  ;;  %v2122_v27 = vadd.f32 %v2090_v51, %v2054_v61  ;;  %v2023_v16 = vmul.f32 %v4014_v23, %v5196_v13  ;;  %v1456_v14 = vsel %vm1420_vm3, %v1419_v43, %v1401_v8 }
 0x1ed   : > { %v3606_v57 = vpop.eup %3605  ;;  %v1601_v36 = vadd.f32 %v1569_v42, %v1533_v53  ;;  %3613 = vrcp.f32 %v2354_v6  ;;  %v1872_v35 = vadd.f32 %v1840_v46, %v1804_v34  ;;  %v1497_v22 = vsel %vm1457_vm4, %v1456_v14, 0.0 }
 0x1ee   : > { %v2448_v18 = vmul.f32 %v3606_v57, %v5173_v26  ;;  %v2190_v52 = vadd.f32 %v2158_v44, %v2122_v27  ;;  %v1987_v29 = vsel %vm1949_vm6, %v1946_v31, 0.0  ;;  %v1637_v24 = vmul.f32 %v3991_v58, %v1497_v22 }
 0x1ef   : > { %v2055_v13 = vadd.f32 %v2023_v16, %v1872_v35  ;;  %v2091_v37 = vmul.f32 %v4031_v38, %v5272_v40  ;;  %v1705_v50 = vmul.f32 %v3960_v10, %v5170_v1  ;;  %v1438_v2 = vsel %vm1420_vm3, %v1401_v8, %v1419_v43 }
 0x1f0   : > { %3325 = vmatmul.mubr.msk.f32.gmra.mxu1 %vm748_vm2, %v2448_v18  ;;  %v5358_v21 = vadd.f32 %v4867_v45, %v2190_v52  ;;  %v1669_v26 = vadd.f32 %v1637_v24, %v1601_v36  ;;  %v2159_v5 = vmul.f32 %v4826_v55, %v1987_v29  ;;  %v1534_v44 = vmul.f32 %v3954_v7, %v5225_v3 }
 0x1f1   : > { %v2123_v51 = vadd.f32 %v2091_v37, %v2055_v13  ;;  %v1570_v28 = vmul.f32 %v3957_v9, %v5298_v15  ;;  %v1773_v30 = vmul.f32 %v3980_v41, %v5246_v17  ;;  %v1892_v1 = vrot.slane %v5319_v19, 1 }
 0x1f2   : > { %v3109_v54 = vmul.f32 -1.442695, %v5358_v21  ;;  %v1737_v47 = vadd.f32 %v1705_v50, %v1669_v26  ;;  %v1910_v59 = vrot.slane %v5328_v56, 1  ;;  %v1638_v8 = vmul.f32 %v3991_v58, %v1438_v2 }
 0x1f3   : > { %v2191_v63 = vadd.f32 %v2159_v5, %v2123_v51  ;;  %v1602_v46 = vadd.f32 %v1570_v28, %v1534_v44  ;;  %v1841_v9 = vmul.f32 %v4001_v11, %v5319_v19  ;;  %v1706_v61 = vmul.f32 %v3960_v10, %v5179_v20  ;;  %v5416_v5 = vld [vmem:[%s5574_s8] ss:$0 sm:$0xff] }
 0x1f4   : > { %v3608_v48 = vpop.eup %3607  ;;  %3615 = vpow2.f32 %v3109_v54  ;;  %v1805_v7 = vadd.f32 %v1773_v30, %v1737_v47  ;;  %v2024_v58 = vmul.f32 %v4014_v23, %v5238_v39  ;;  %v1929_v19 = vsel %vm1911_vm5, %v1892_v1, %v1910_v59 }
 0x1f5   : > { %v2355_v60 = vadd.f32 1.0, %v3608_v48  ;;  %v3610_v3 = vpop.eup %3609  ;;  %v5378_v15 = vadd.f32 %v4867_v45, %v2191_v63  ;;  %v1670_v17 = vadd.f32 %v1638_v8, %v1602_v46  ;;  %v1774_v34 = vmul.f32 %v3980_v41, %v5255_v62 }
 0x1f6   : > { %v2449_v43 = vmul.f32 %v3610_v3, %v5220_v0  ;;  %v1873_v53 = vadd.f32 %v1841_v9, %v1805_v7  ;;  %v2092_v20 = vmul.f32 %v4031_v38, %v5311_v33  ;;  %v1842_v0 = vmul.f32 %v4001_v11, %v5328_v56 }
 0x1f7   : > { %3617 = vrcp.f32 %v2355_v60  ;;  %v3110_v42 = vmul.f32 -1.442695, %v5378_v15  ;;  %v1738_v6 = vadd.f32 %v1706_v61, %v1670_v17  ;;  %v1947_v27 = vsel %vm1911_vm5, %v1910_v59, %v1892_v1  ;;  %v3637_v1 = vld [vmem:[%s3778_s20 + $0x8] sm:$0xff]  ;;  %v3638_v59 = vld [vmem:[%s3778_s20] sm:$0xff]  ;;  %v3639_v61 = vld [vmem:[%s3778_s20 + $0x18] sm:$0xff] }
 0x1f8   : > { %3327 = vmatprep.mubr.msk.f32.mxu1 %vm748_vm2, %v2449_v43  ;;  %v2056_v10 = vadd.f32 %v2024_v58, %v1873_v53  ;;  %v2160_v41 = vmul.f32 %v4826_v55, %v1929_v19  ;;  %v2025_v33 = vmul.f32 %v4014_v23, %v5272_v40  ;;  %v1989_v11 = vsel %vm1949_vm6, %v1947_v27, 0.0  ;;  %v3640_v58 = vld [vmem:[%s3778_s20 + $0x10] sm:$0xff] }
 0x1f9   : > { %v3612_v31 = vpop.eup %3611  ;;  %3619 = vpow2.f32 %v3110_v42  ;;  %v1806_v57 = vadd.f32 %v1774_v34, %v1738_v6  ;;  %v2093_v32 = vmul.f32 %v4031_v38, %v1987_v29  ;;  %v2161_v52 = vmul.f32 %v4826_v55, %v1989_v11 }
 0x1fa   : > { %v2356_v39 = vadd.f32 1.0, %v3612_v31  ;;  %v3614_v16 = vpop.eup %3613  ;;  %v2124_v14 = vadd.f32 %v2092_v20, %v2056_v10  ;;  %v3641_v31 = vld [vmem:[%s3778_s20 + $0x28] sm:$0xff] }
 0x1fb   : > { %v2450_v62 = vmul.f32 %v3614_v16, %v5249_v12  ;;  %v1874_v36 = vadd.f32 %v1842_v0, %v1806_v57  ;;  %v3642_v0 = vld [vmem:[%s3778_s20 + $0x20] sm:$0xff] }
 0x1fc   : > { %3621 = vrcp.f32 %v2356_v39  ;;  %v2192_v18 = vadd.f32 %v2160_v41, %v2124_v14  ;;  %v3643_v14 = vld [vmem:[%s3778_s20 + $0x38] sm:$0xff] }
 0x1fd   : > { %3328 = vmatmul.mubr.msk.f32.gmra.mxu1 %vm748_vm2, %v2450_v62  ;;  %v2057_v56 = vadd.f32 %v2025_v33, %v1874_v36  ;;  %v3644_v36 = vld [vmem:[%s3778_s20 + $0x30] sm:$0xff] }
 0x1fe   : > { %v2231_v35 = vadd.f32 %v4867_v45, %v2192_v18 }
 0x1ff   : > { %v2125_v22 = vadd.f32 %v2093_v32, %v2057_v56  ;;  %v3645_v32 = vld [vmem:[%s3778_s20 + $0x48] sm:$0xff] }
 0x200   : > { %v3111_v12 = vmul.f32 -1.442695, %v2231_v35 }
 0x201   : > { %v3616_v24 = vpop.eup %3615  ;;  %v2193_v13 = vadd.f32 %v2161_v52, %v2125_v22  ;;  %v3646_v52 = vld [vmem:[%s3778_s20 + $0x40] sm:$0xff] }
 0x202   : > { %v2357_v37 = vadd.f32 1.0, %v3616_v24  ;;  %3623 = vpow2.f32 %v3111_v12 }
 0x203   : > { %v2232_v40 = vadd.f32 %v4867_v45, %v2193_v13 }
 0x204   : > { %v3618_v23 = vpop.eup %3617  ;;  %3625 = vrcp.f32 %v2357_v37 }
 0x205   : > { %v2451_v25 = vmul.f32 %v3618_v23, %v5293_v4  ;;  %v3112_v26 = vmul.f32 -1.442695, %v2232_v40  ;;  %v3647_v23 = vld [vmem:[%s3778_s20 + $0x58] sm:$0xff] }
 0x206   : > { %v3620_v50 = vpop.eup %3619 }
 0x207   : > { %3330 = vmatprep.mubr.msk.f32.mxu1 %vm748_vm2, %v2451_v25  ;;  %v2358_v38 = vadd.f32 1.0, %v3620_v50  ;;  %3627 = vpow2.f32 %v3112_v26  ;;  %v3648_v26 = vld [vmem:[%s3778_s20 + $0x50] sm:$0xff] }
 0x209   : > { %v3622_v29 = vpop.eup %3621  ;;  %3629 = vrcp.f32 %v2358_v38 }
 0x20a   : > { %v2452_v55 = vmul.f32 %v3622_v29, %v5322_v49 }
 0x20c   : > { %3331 = vmatmul.mubr.msk.f32.gmra.mxu1 %vm748_vm2, %v2452_v55 }
 0x20f   : > { %v3624_v2 = vpop.eup %3623 }
 0x210   : > { %v2359_v51 = vadd.f32 1.0, %v3624_v2  ;;  %v3649_v2 = vld [vmem:[%s3778_s20 + $0x68] sm:$0xff] }
 0x211   : > { %v3626_v45 = vpop.eup %3625 }
 0x212   : > { %v2453_v4 = vmul.f32 %v3626_v45, %v5358_v21  ;;  %3631 = vrcp.f32 %v2359_v51 }
 0x214   : > { %v3628_v44 = vpop.eup %3627  ;;  %3333 = vmatprep.mubr.msk.f32.mxu1 %vm748_vm2, %v2453_v4  ;;  %v3650_v4 = vld [vmem:[%s3778_s20 + $0x60] sm:$0xff] }
 0x215   : > { %v2360_v49 = vadd.f32 1.0, %v3628_v44 }
 0x216   : > { %v3293_v28 = vpop.f32.mrf.mxu1  ;;  %v3630_v54 = vpop.eup %3629 }
 0x217   : > { %v2634_v47 = vadd.f32 %v3293_v28, %v5416_v5  ;;  %v2454_v21 = vmul.f32 %v3630_v54, %v5378_v15  ;;  %3633 = vrcp.f32 %v2360_v49 }
 0x218   : > { %v2628_v30 = vpop.f32.mrf.mxu1 }
 0x219   : > { %v2788_v48 = vadd.f32 %v3637_v1, %v2634_v47  ;;  %v2629_v63 = vadd.f32 %v5416_v5, %v2628_v30  ;;  %3334 = vmatmul.mubr.msk.f32.gmra.mxu1 %vm748_vm2, %v2454_v21  ;;  %v3651_v47 = vld [vmem:[%s3778_s20 + $0x78] sm:$0xff]  ;;  %v3652_v1 = vld [vmem:[%s3778_s20 + $0x70] sm:$0xff] }
 0x21b   : > { %2820 = vst.msk [vmem:[%s5424_s14 + $0x8] sm:$0xff] %vm543_vm1, %v2788_v48  ;;  %v2787_v46 = vadd.f32 %v3638_v59, %v2629_v63 }
 0x21d   : > { %2819 = vst.msk [vmem:[%s5424_s14] sm:$0xff] %vm543_vm1, %v2787_v46 }
 0x21f   : > { %v3632_v8 = vpop.eup %3631 }
 0x220   : > { %v2455_v60 = vmul.f32 %v3632_v8, %v2231_v35  ;;  %v3653_v8 = vld [vmem:[%s3778_s20 + $0x88] sm:$0xff] }
 0x222   : > { %3336 = vmatprep.mubr.msk.f32.mxu1 %vm748_vm2, %v2455_v60 }
 0x224   : > { %v3634_v7 = vpop.eup %3633 }
 0x225   : > { %v2456_v9 = vmul.f32 %v3634_v7, %v2232_v40 }
 0x227   : > { %v3296_v3 = vpop.f32.mrf.mxu1  ;;  %3337 = vmatmul.mubr.msk.f32.gmra.mxu1 %vm748_vm2, %v2456_v9  ;;  %v3654_v9 = vld [vmem:[%s3778_s20 + $0x80] sm:$0xff] }
 0x228   : > { %v2644_v15 = vadd.f32 %v3296_v3, %v5416_v5 }
 0x229   : > { %v2638_v17 = vpop.f32.mrf.mxu1 }
 0x22a   : > { %v2790_v43 = vadd.f32 %v3639_v61, %v2644_v15  ;;  %v2639_v53 = vadd.f32 %v5416_v5, %v2638_v17 }
 0x22c   : > { %2822 = vst.msk [vmem:[%s5424_s14 + $0x18] sm:$0xff] %vm543_vm1, %v2790_v43  ;;  %v2789_v42 = vadd.f32 %v3640_v58, %v2639_v53  ;;  %v3655_v43 = vld [vmem:[%s3778_s20 + $0x98] sm:$0xff] }
 0x22e   : > { %2821 = vst.msk [vmem:[%s5424_s14 + $0x10] sm:$0xff] %vm543_vm1, %v2789_v42  ;;  %v3656_v42 = vld [vmem:[%s3778_s20 + $0x90] sm:$0xff] }
 0x232   : > { %v3299_v19 = vpop.f32.mrf.mxu1 }
 0x233   : > { %v2654_v6 = vadd.f32 %v3299_v19, %v5416_v5 }
 0x234   : > { %v2648_v34 = vpop.f32.mrf.mxu1 }
 0x235   : > { %v2792_v10 = vadd.f32 %v3641_v31, %v2654_v6  ;;  %v2649_v20 = vadd.f32 %v5416_v5, %v2648_v34 }
 0x237   : > { %2824 = vst.msk [vmem:[%s5424_s14 + $0x28] sm:$0xff] %vm543_vm1, %v2792_v10  ;;  %v2791_v39 = vadd.f32 %v3642_v0, %v2649_v20  ;;  %v3657_v10 = vld [vmem:[%s3778_s20 + $0xa8] sm:$0xff] }
 0x239   : > { %2823 = vst.msk [vmem:[%s5424_s14 + $0x20] sm:$0xff] %vm543_vm1, %v2791_v39  ;;  %v3658_v39 = vld [vmem:[%s3778_s20 + $0xa0] sm:$0xff] }
 0x240   : > { %v3302_v57 = vpop.f32.mrf.mxu1 }
 0x241   : > { %v2664_v27 = vadd.f32 %v3302_v57, %v5416_v5 }
 0x242   : > { %v2658_v16 = vpop.f32.mrf.mxu1 }
 0x243   : > { %v2794_v41 = vadd.f32 %v3643_v14, %v2664_v27  ;;  %v2659_v62 = vadd.f32 %v5416_v5, %v2658_v16 }
 0x245   : > { %2826 = vst.msk [vmem:[%s5424_s14 + $0x38] sm:$0xff] %vm543_vm1, %v2794_v41  ;;  %v2793_v33 = vadd.f32 %v3644_v36, %v2659_v62  ;;  %v3659_v41 = vld [vmem:[%s3778_s20 + $0xb8] sm:$0xff] }
 0x247   : > { %2825 = vst.msk [vmem:[%s5424_s14 + $0x30] sm:$0xff] %vm543_vm1, %v2793_v33  ;;  %v3660_v33 = vld [vmem:[%s3778_s20 + $0xb0] sm:$0xff] }
 0x24f   : > { %v3305_v18 = vpop.f32.mrf.mxu1 }
 0x250   : > { %v2674_v11 = vadd.f32 %v3305_v18, %v5416_v5 }
 0x251   : > { %v2668_v56 = vpop.f32.mrf.mxu1 }
 0x252   : > { %v2796_v35 = vadd.f32 %v3645_v32, %v2674_v11  ;;  %v2669_v22 = vadd.f32 %v5416_v5, %v2668_v56 }
 0x254   : > { %2828 = vst.msk [vmem:[%s5424_s14 + $0x48] sm:$0xff] %vm543_vm1, %v2796_v35  ;;  %v2795_v12 = vadd.f32 %v3646_v52, %v2669_v22  ;;  %v3661_v35 = vld [vmem:[%s3778_s20 + $0xc8] sm:$0xff] }
 0x256   : > { %2827 = vst.msk [vmem:[%s5424_s14 + $0x40] sm:$0xff] %vm543_vm1, %v2795_v12  ;;  %v3662_v12 = vld [vmem:[%s3778_s20 + $0xc0] sm:$0xff] }
 0x25d   : > { %v3308_v24 = vpop.f32.mrf.mxu1 }
 0x25e   : > { %v2684_v13 = vadd.f32 %v3308_v24, %v5416_v5 }
 0x25f   : > { %v2678_v37 = vpop.f32.mrf.mxu1 }
 0x260   : > { %v2798_v40 = vadd.f32 %v3647_v23, %v2684_v13  ;;  %v2679_v25 = vadd.f32 %v5416_v5, %v2678_v37 }
 0x262   : > { %2830 = vst.msk [vmem:[%s5424_s14 + $0x58] sm:$0xff] %vm543_vm1, %v2798_v40  ;;  %v2797_v50 = vadd.f32 %v3648_v26, %v2679_v25  ;;  %v3663_v40 = vld [vmem:[%s3778_s20 + $0xd8] sm:$0xff] }
 0x264   : > { %2829 = vst.msk [vmem:[%s5424_s14 + $0x50] sm:$0xff] %vm543_vm1, %v2797_v50  ;;  %v3664_v50 = vld [vmem:[%s3778_s20 + $0xd0] sm:$0xff] }
 0x269   : > { %v3311_v38 = vpop.f32.mrf.mxu1 }
 0x26a   : > { %v2694_v29 = vadd.f32 %v3311_v38, %v5416_v5 }
 0x26b   : > { %v2688_v55 = vpop.f32.mrf.mxu1 }
 0x26c   : > { %v2800_v51 = vadd.f32 %v3649_v2, %v2694_v29  ;;  %v2689_v45 = vadd.f32 %v5416_v5, %v2688_v55 }
 0x26e   : > { %2832 = vst.msk [vmem:[%s5424_s14 + $0x68] sm:$0xff] %vm543_vm1, %v2800_v51  ;;  %v2799_v44 = vadd.f32 %v3650_v4, %v2689_v45  ;;  %v3665_v51 = vld [vmem:[%s3778_s20 + $0xe8] sm:$0xff] }
 0x270   : > { %2831 = vst.msk [vmem:[%s5424_s14 + $0x60] sm:$0xff] %vm543_vm1, %v2799_v44  ;;  %v3666_v44 = vld [vmem:[%s3778_s20 + $0xe0] sm:$0xff] }
 0x277   : > { %v3314_v49 = vpop.f32.mrf.mxu1 }
 0x278   : > { %v2704_v28 = vadd.f32 %v3314_v49, %v5416_v5 }
 0x279   : > { %v2698_v54 = vpop.f32.mrf.mxu1 }
 0x27a   : > { %v2802_v21 = vadd.f32 %v3651_v47, %v2704_v28  ;;  %v2699_v30 = vadd.f32 %v5416_v5, %v2698_v54 }
 0x27c   : > { %2834 = vst.msk [vmem:[%s5424_s14 + $0x78] sm:$0xff] %vm543_vm1, %v2802_v21  ;;  %v2801_v48 = vadd.f32 %v3652_v1, %v2699_v30  ;;  %v3667_v21 = vld [vmem:[%s3778_s20 + $0xf8] sm:$0xff] }
 0x27e   : > { %2833 = vst.msk [vmem:[%s5424_s14 + $0x70] sm:$0xff] %vm543_vm1, %v2801_v48  ;;  %v3668_v48 = vld [vmem:[%s3778_s20 + $0xf0] sm:$0xff] }
 0x285   : > { %v3317_v63 = vpop.f32.mrf.mxu1 }
 0x286   : > { %v2714_v59 = vadd.f32 %v3317_v63, %v5416_v5 }
 0x287   : > { %v2708_v46 = vpop.f32.mrf.mxu1 }
 0x288   : > { %v2804_v60 = vadd.f32 %v3653_v8, %v2714_v59  ;;  %v2709_v7 = vadd.f32 %v5416_v5, %v2708_v46 }
 0x28a   : > { %2836 = vst.msk [vmem:[%s5424_s14 + $0x88] sm:$0xff] %vm543_vm1, %v2804_v60  ;;  %v2803_v3 = vadd.f32 %v3654_v9, %v2709_v7 }
 0x28c   : > { %2835 = vst.msk [vmem:[%s5424_s14 + $0x80] sm:$0xff] %vm543_vm1, %v2803_v3 }
 0x294   : > { %v3320_v15 = vpop.f32.mrf.mxu1 }
 0x295   : > { %v2724_v17 = vadd.f32 %v3320_v15, %v5416_v5 }
 0x296   : > { %v2718_v61 = vpop.f32.mrf.mxu1 }
 0x297   : > { %v2806_v53 = vadd.f32 %v3655_v43, %v2724_v17  ;;  %v2719_v58 = vadd.f32 %v5416_v5, %v2718_v61 }
 0x299   : > { %2838 = vst.msk [vmem:[%s5424_s14 + $0x98] sm:$0xff] %vm543_vm1, %v2806_v53  ;;  %v2805_v19 = vadd.f32 %v3656_v42, %v2719_v58 }
 0x29b   : > { %2837 = vst.msk [vmem:[%s5424_s14 + $0x90] sm:$0xff] %vm543_vm1, %v2805_v19 }
 0x2a1   : > { %v3323_v6 = vpop.f32.mrf.mxu1 }
 0x2a2   : > { %v2734_v34 = vadd.f32 %v3323_v6, %v5416_v5 }
 0x2a3   : > { %v2728_v31 = vpop.f32.mrf.mxu1 }
 0x2a4   : > { %v2808_v20 = vadd.f32 %v3657_v10, %v2734_v34  ;;  %v2729_v0 = vadd.f32 %v5416_v5, %v2728_v31 }
 0x2a6   : > { %2840 = vst.msk [vmem:[%s5424_s14 + $0xa8] sm:$0xff] %vm543_vm1, %v2808_v20  ;;  %v2807_v57 = vadd.f32 %v3658_v39, %v2729_v0 }
 0x2a8   : > { %2839 = vst.msk [vmem:[%s5424_s14 + $0xa0] sm:$0xff] %vm543_vm1, %v2807_v57 }
 0x2b0   : > { %v3326_v27 = vpop.f32.mrf.mxu1 }
 0x2b1   : > { %v2744_v16 = vadd.f32 %v3326_v27, %v5416_v5 }
 0x2b2   : > { %v2738_v14 = vpop.f32.mrf.mxu1 }
 0x2b3   : > { %v2810_v62 = vadd.f32 %v3659_v41, %v2744_v16  ;;  %v2739_v36 = vadd.f32 %v5416_v5, %v2738_v14 }
 0x2b5   : > { %2842 = vst.msk [vmem:[%s5424_s14 + $0xb8] sm:$0xff] %vm543_vm1, %v2810_v62  ;;  %v2809_v18 = vadd.f32 %v3660_v33, %v2739_v36 }
 0x2b7   : > { %2841 = vst.msk [vmem:[%s5424_s14 + $0xb0] sm:$0xff] %vm543_vm1, %v2809_v18 }
 0x2bd   : > { %v3329_v11 = vpop.f32.mrf.mxu1 }
 0x2be   : > { %v2754_v56 = vadd.f32 %v3329_v11, %v5416_v5 }
 0x2bf   : > { %v2748_v32 = vpop.f32.mrf.mxu1 }
 0x2c0   : > { %v2812_v22 = vadd.f32 %v3661_v35, %v2754_v56  ;;  %v2749_v52 = vadd.f32 %v5416_v5, %v2748_v32 }
 0x2c2   : > { %2844 = vst.msk [vmem:[%s5424_s14 + $0xc8] sm:$0xff] %vm543_vm1, %v2812_v22  ;;  %v2811_v24 = vadd.f32 %v3662_v12, %v2749_v52 }
 0x2c4   : > { %2843 = vst.msk [vmem:[%s5424_s14 + $0xc0] sm:$0xff] %vm543_vm1, %v2811_v24 }
 0x2cc   : > { %v3332_v13 = vpop.f32.mrf.mxu1 }
 0x2cd   : > { %v2764_v37 = vadd.f32 %v3332_v13, %v5416_v5 }
 0x2ce   : > { %v2758_v23 = vpop.f32.mrf.mxu1 }
 0x2cf   : > { %v2814_v25 = vadd.f32 %v3663_v40, %v2764_v37  ;;  %v2759_v26 = vadd.f32 %v5416_v5, %v2758_v23 }
 0x2d1   : > { %2846 = vst.msk [vmem:[%s5424_s14 + $0xd8] sm:$0xff] %vm543_vm1, %v2814_v25  ;;  %v2813_v38 = vadd.f32 %v3664_v50, %v2759_v26 }
 0x2d3   : > { %2845 = vst.msk [vmem:[%s5424_s14 + $0xd0] sm:$0xff] %vm543_vm1, %v2813_v38 }
 0x2d9   : > { %v3335_v29 = vpop.f32.mrf.mxu1 }
 0x2da   : > { %v2774_v55 = vadd.f32 %v3335_v29, %v5416_v5 }
 0x2db   : > { %v2768_v2 = vpop.f32.mrf.mxu1 }
 0x2dc   : > { %v2816_v45 = vadd.f32 %v3665_v51, %v2774_v55  ;;  %v2769_v4 = vadd.f32 %v5416_v5, %v2768_v2 }
 0x2de   : > { %2848 = vst.msk [vmem:[%s5424_s14 + $0xe8] sm:$0xff] %vm543_vm1, %v2816_v45  ;;  %v2815_v49 = vadd.f32 %v3666_v44, %v2769_v4 }
 0x2e0   : > { %2847 = vst.msk [vmem:[%s5424_s14 + $0xe0] sm:$0xff] %vm543_vm1, %v2815_v49 }
 0x2e7   : > { %v3338_v28 = vpop.f32.mrf.mxu1 }
 0x2e8   : > { %v2784_v54 = vadd.f32 %v3338_v28, %v5416_v5 }
 0x2e9   : > { %v2778_v47 = vpop.f32.mrf.mxu1 }
 0x2ea   : > { %v2818_v30 = vadd.f32 %v3667_v21, %v2784_v54  ;;  %v2779_v1 = vadd.f32 %v5416_v5, %v2778_v47 }
 0x2ec   : > { %2850 = vst.msk [vmem:[%s5424_s14 + $0xf8] sm:$0xff] %vm543_vm1, %v2818_v30  ;;  %v2817_v63 = vadd.f32 %v3668_v48, %v2779_v1 }
 0x2ee   : > { %2849 = vst.msk [vmem:[%s5424_s14 + $0xf0] sm:$0xff] %vm543_vm1, %v2817_v63 }
 0x2ef PF: > { %s19_s11 = sadd.s32 1, %s3691_s11   ;;  %s5576_s30 = smov %s3687_s10 }
 0x2f0   : > { %p16_p5 = scmp.ge.s32.totalorder %s19_s11, 4   ;;  %s5577_s10 = smov %s5579_s12 }
 0x2f2   :  { %18 = sbr.rel (!%p16_p5) target bundleno = 2 (0x2), region = 94 }

</bundles_post_ra>
